<compile_context>
chip_gen: v5e
topology: v5e:2x2
jax: 0.10.0
libtpu: 0.0.40
codegen_flags: <defaults>
</compile_context>

<pallas_src>
import jax
import jax.numpy as jnp
from jax.experimental import pallas as pl
from jax.experimental.pallas import tpu as pltpu


def _tpu_defaults():
    """Per-generation tile size / VMEM budget / epilogue dtype."""
    try:
        kind = jax.devices()[0].device_kind.lower()
    except Exception:
        kind = ""
    if "v7" in kind or "7x" in kind:
        # 64 MiB VMEM per TensorCore, 2 TCs per chip, bf16 VPU.
        return {"tile_px": 8192, "vmem_limit": 48 * 1024 * 1024,
                "bf16_epilogue": True, "split_for_two_cores": True}
    if "v5" in kind:
        # 128 MiB VMEM, no bf16 VPU -> keep the elementwise epilogue in f32.
        return {"tile_px": 16384, "vmem_limit": 100 * 1024 * 1024,
                "bf16_epilogue": False, "split_for_two_cores": False}
    if "v6" in kind:
        # 128 MiB VMEM, bf16 VPU.
        return {"tile_px": 16384, "vmem_limit": 100 * 1024 * 1024,
                "bf16_epilogue": True, "split_for_two_cores": False}
    # Unknown generation: conservative settings, correct everywhere.
    return {"tile_px": 4096, "vmem_limit": 48 * 1024 * 1024,
            "bf16_epilogue": False, "split_for_two_cores": False}


def _make_kernel(num_layers, use_softmax, bf16_epilogue):
    """Fused kernel body for a fixed number of 1x1-conv layers."""

    def kernel(x_ref, *refs):
        o_ref = refs[-1]
        wb_refs = refs[:-1]  # w0, b0, w1, b1, ...

        # Input tile: (C_in, tile_px) f32 -> bf16 for the MXU.
        h = x_ref[...].astype(jnp.bfloat16)

        for li in range(num_layers):
            w_ref = wb_refs[2 * li]       # (Cout_l, Cin_l) bf16
            b_ref = wb_refs[2 * li + 1]   # (Cout_l, 1)     f32
            # 1x1 conv == matmul over channels; bf16 operands, f32 accumulation.
            acc = jnp.dot(w_ref[...], h,
                          preferred_element_type=jnp.float32) + b_ref[...]
            if li < num_layers - 1:
                # LeakyReLU(0.2) in maximum form (slope < 1 => identical).
                if bf16_epilogue:
                    hb = acc.astype(jnp.bfloat16)      # bf16 VPU (v6e/v7x)
                    h = jnp.maximum(hb, 0.2 * hb)
                else:
                    acc = jnp.maximum(acc, 0.2 * acc)  # f32 VPU (v5e)
                    h = acc.astype(jnp.bfloat16)
            else:
                h = jnp.maximum(acc, 0.0)              # final ReLU, f32

        if use_softmax:
            # Softmax over channels == sublane (first-axis) reduce, per lane.
            m = jnp.max(h, axis=0, keepdims=True)
            e = jnp.exp(h - m)
            denom = jnp.sum(e, axis=0, keepdims=True)
            h = e * pl.reciprocal(denom, approx=True)  # EUP recip, free slot

        o_ref[...] = h.astype(o_ref.dtype)

    return kernel


def channelwise_encoder(x_nchw, params, *, use_softmax=True, tile_px=None,
                        out_dtype=jnp.float32):
    """Fused ChannelWiseEncoder forward.

    x_nchw : (N, C_in, H, W) float32
    params : list of (W, b) with W of shape (Cout, Cin)  (== torch weight[:,:,0,0])
             and b of shape (Cout, 1), all float32.
    tile_px: pixels per grid step (lane dim); None -> per-generation default.
    """
    N, C_in, H, W = x_nchw.shape
    num_layers = len(params)
    C_out = params[-1][0].shape[0]
    HW = H * W

    cfg = _tpu_defaults()
    if tile_px is None:
        tile_px = cfg["tile_px"]

    # Lane-tile size: multiple of 128, clamped to the (128-rounded) pixel count.
    hw_pad128 = ((HW + 127) // 128) * 128
    # v7x: make sure a single-image call still produces >= 2 grid steps so both
    # TensorCores get work under dimension_semantics=("parallel", "parallel").
    if cfg["split_for_two_cores"] and N == 1 and hw_pad128 >= 256:
        half = ((HW + 1) // 2 + 127) // 128 * 128
        tile_px = min(tile_px, max(128, half))
    tile_px = max(128, min(tile_px, hw_pad128))
    tile_px = (tile_px // 128) * 128

    grid = (N, pl.cdiv(HW, tile_px))

    # NCHW -> (N, C_in, H*W): a free reshape — no transpose, no pad, no slice.
    x3d = x_nchw.reshape(N, C_in, HW)

    # Weights in bf16 (MXU-native); biases stay f32.
    flat_wb = []
    for w, b in params:
        flat_wb.append(w.astype(jnp.bfloat16))
        flat_wb.append(b.astype(jnp.float32))

    # Weights/biases are tiny (~100 KiB total): keep them whole in VMEM,
    # outside the grid pipeline (no double buffering, no per-step DMA).
    resident_vmem = pl.BlockSpec(memory_space=pltpu.MemorySpace.VMEM)

    out3d = pl.pallas_call(
        _make_kernel(num_layers, use_softmax, cfg["bf16_epilogue"]),
        out_shape=jax.ShapeDtypeStruct((N, C_out, HW), out_dtype),
        grid_spec=pltpu.PrefetchScalarGridSpec(
            num_scalar_prefetch=0,
            grid=grid,
            in_specs=[
                # squeezed batch dim; (C_in, tile_px) block, lane-dense.
                pl.BlockSpec((None, C_in, tile_px), lambda b, p: (b, 0, p)),
            ] + [resident_vmem] * (2 * num_layers),
            out_specs=pl.BlockSpec((None, C_out, tile_px),
                                   lambda b, p: (b, 0, p)),
        ),
        compiler_params=pltpu.CompilerParams(
            dimension_semantics=("parallel", "parallel"),
            vmem_limit_bytes=cfg["vmem_limit"],
        ),
    )(x3d, *flat_wb)

    return out3d.reshape(N, C_out, H, W)


def init_params(key, input_channels, output_channels,
                intermediate_channels=(64, 128, 256)):
    """Deterministic init mimicking PyTorch Conv2d default (Kaiming-uniform-ish).

    Weights stored as (Cout, Cin) == torch conv weight[:, :, 0, 0];
    biases stored as (Cout, 1).
    """
    dims = [input_channels, *intermediate_channels, output_channels]
    params = []
    for li in range(len(dims) - 1):
        cin, cout = dims[li], dims[li + 1]
        key, kw, kb = jax.random.split(key, 3)
        bound = 1.0 / (cin ** 0.5)  # fan_in = cin * 1 * 1
        w = jax.random.uniform(kw, (cout, cin), jnp.float32, -bound, bound)
        b = jax.random.uniform(kb, (cout, 1), jnp.float32, -bound, bound)
        params.append((w, b))
    return params


def _reference_encoder(x_nchw, params, use_softmax=True):
    """Pure-JAX f32 reference of the PyTorch module's forward pass."""
    N, C_in, H, W = x_nchw.shape
    h = x_nchw.reshape(N, C_in, H * W)
    n_layers = len(params)
    for li, (w, b) in enumerate(params):
        h = jnp.einsum('oc,ncp->nop', w, h) + b[None]
        if li < n_layers - 1:
            h = jnp.where(h > 0, h, 0.2 * h)
        else:
            h = jnp.maximum(h, 0.0)
    if use_softmax:
        h = jax.nn.softmax(h, axis=1)
    C_out = params[-1][0].shape[0]
    return h.reshape(N, C_out, H, W)


if __name__ == "__main__":
    key = jax.random.PRNGKey(0)
    k_x, k_p, k_x2 = jax.random.split(key, 3)

    N, C_in, H, W = 2, 4, 16, 16
    C_out = 8

    x = jax.random.normal(k_x, (N, C_in, H, W), jnp.float32)
    params = init_params(k_p, C_in, C_out)

    out = jax.block_until_ready(channelwise_encoder(x, params))
    assert out.shape == (N, C_out, H, W)

    # Match the f32 reference (bf16 matmuls + approx reciprocal => loose tol).
    ref = _reference_encoder(x, params)
    assert bool(jnp.allclose(out, ref, atol=5e-2))

    # Channel softmax sums to ~1 (approx reciprocal => small tolerance).
    sums = jnp.sum(out, axis=1)
    assert bool(jnp.allclose(sums, 1.0, atol=1e-2))

    # Ragged spatial size (H*W not a multiple of 128) exercises the pad-free
    # cdiv grid with a masked boundary block.
    x2 = jax.random.normal(k_x2, (1, C_in, 9, 9), jnp.float32)
    out2 = jax.block_until_ready(channelwise_encoder(x2, params))
    ref2 = _reference_encoder(x2, params)
    assert out2.shape == (1, C_out, 9, 9)
    assert bool(jnp.allclose(out2, ref2, atol=5e-2))

    print("KERNEL_OK")
</pallas_src>

<mosaic_0001>
module attributes {stable_mosaic.version = 11 : i64} {
  func.func @kernel(%arg0: i32, %arg1: i32, %arg2: memref<1x4x256xf32, #tpu.memory_space<vmem>>, %arg3: memref<64x4xbf16, #tpu.memory_space<vmem>>, %arg4: memref<64x1xf32, #tpu.memory_space<vmem>>, %arg5: memref<128x64xbf16, #tpu.memory_space<vmem>>, %arg6: memref<128x1xf32, #tpu.memory_space<vmem>>, %arg7: memref<256x128xbf16, #tpu.memory_space<vmem>>, %arg8: memref<256x1xf32, #tpu.memory_space<vmem>>, %arg9: memref<8x256xbf16, #tpu.memory_space<vmem>>, %arg10: memref<8x1xf32, #tpu.memory_space<vmem>>, %arg11: memref<1x8x256xf32, #tpu.memory_space<vmem>>) attributes {dimension_semantics = [#tpu.dimension_semantics<parallel>, #tpu.dimension_semantics<parallel>], iteration_bounds = array<i64: 2, 1>, scalar_prefetch = 0 : i64, scratch_operands = 0 : i64, tpu.core_type = #tpu.core_type<tc>, window_params = [{transform_indices = @transform_0, window_bounds = array<i64: 1, 4, 256>}, {pipeline_mode = #tpu.pipeline_mode<synchronous>, transform_indices = @transform_1, window_bounds = array<i64: 64, 4>}, {pipeline_mode = #tpu.pipeline_mode<synchronous>, transform_indices = @transform_2, window_bounds = array<i64: 64, 1>}, {pipeline_mode = #tpu.pipeline_mode<synchronous>, transform_indices = @transform_3, window_bounds = array<i64: 128, 64>}, {pipeline_mode = #tpu.pipeline_mode<synchronous>, transform_indices = @transform_4, window_bounds = array<i64: 128, 1>}, {pipeline_mode = #tpu.pipeline_mode<synchronous>, transform_indices = @transform_5, window_bounds = array<i64: 256, 128>}, {pipeline_mode = #tpu.pipeline_mode<synchronous>, transform_indices = @transform_6, window_bounds = array<i64: 256, 1>}, {pipeline_mode = #tpu.pipeline_mode<synchronous>, transform_indices = @transform_7, window_bounds = array<i64: 8, 256>}, {pipeline_mode = #tpu.pipeline_mode<synchronous>, transform_indices = @transform_8, window_bounds = array<i64: 8, 1>}, {transform_indices = @transform_9, window_bounds = array<i64: 1, 8, 256>}]} {
    %c0 = arith.constant 0 : index
    %c0_0 = arith.constant 0 : index
    %c0_1 = arith.constant 0 : index
    %0 = vector.load %arg2[%c0, %c0_0, %c0_1] : memref<1x4x256xf32, #tpu.memory_space<vmem>>, vector<1x4x256xf32>
    %1 = vector.shape_cast %0 : vector<1x4x256xf32> to vector<4x256xf32>
    %2 = arith.truncf %1 : vector<4x256xf32> to vector<4x256xbf16>
    %c0_2 = arith.constant 0 : index
    %c0_3 = arith.constant 0 : index
    %3 = vector.load %arg3[%c0_2, %c0_3] : memref<64x4xbf16, #tpu.memory_space<vmem>>, vector<64x4xbf16>
    %cst = arith.constant dense<0.000000e+00> : vector<64x256xf32>
    %4 = tpu.matmul %3, %2, %cst {dimension_numbers = #tpu.dot_dimension_numbers<[1], [0], [0], [1], [0, 0, 1, 1], [], []>} : vector<64x4xbf16>, vector<4x256xbf16>, vector<64x256xf32> -> vector<64x256xf32>
    %c0_4 = arith.constant 0 : index
    %c0_5 = arith.constant 0 : index
    %5 = vector.load %arg4[%c0_4, %c0_5] : memref<64x1xf32, #tpu.memory_space<vmem>>, vector<64x1xf32>
    %6 = vector.broadcast %5 : vector<64x1xf32> to vector<64x256xf32>
    %7 = arith.addf %4, %6 : vector<64x256xf32>
    %cst_6 = arith.constant 2.000000e-01 : f32
    %8 = vector.broadcast %cst_6 : f32 to vector<64x256xf32>
    %9 = arith.mulf %8, %7 : vector<64x256xf32>
    %10 = arith.maximumf %7, %9 : vector<64x256xf32>
    %11 = arith.truncf %10 : vector<64x256xf32> to vector<64x256xbf16>
    %c0_7 = arith.constant 0 : index
    %c0_8 = arith.constant 0 : index
    %12 = vector.load %arg5[%c0_7, %c0_8] : memref<128x64xbf16, #tpu.memory_space<vmem>>, vector<128x64xbf16>
    %cst_9 = arith.constant dense<0.000000e+00> : vector<128x256xf32>
    %13 = tpu.matmul %12, %11, %cst_9 {dimension_numbers = #tpu.dot_dimension_numbers<[1], [0], [0], [1], [0, 0, 1, 1], [], []>} : vector<128x64xbf16>, vector<64x256xbf16>, vector<128x256xf32> -> vector<128x256xf32>
    %c0_10 = arith.constant 0 : index
    %c0_11 = arith.constant 0 : index
    %14 = vector.load %arg6[%c0_10, %c0_11] : memref<128x1xf32, #tpu.memory_space<vmem>>, vector<128x1xf32>
    %15 = vector.broadcast %14 : vector<128x1xf32> to vector<128x256xf32>
    %16 = arith.addf %13, %15 : vector<128x256xf32>
    %cst_12 = arith.constant 2.000000e-01 : f32
    %17 = vector.broadcast %cst_12 : f32 to vector<128x256xf32>
    %18 = arith.mulf %17, %16 : vector<128x256xf32>
    %19 = arith.maximumf %16, %18 : vector<128x256xf32>
    %20 = arith.truncf %19 : vector<128x256xf32> to vector<128x256xbf16>
    %c0_13 = arith.constant 0 : index
    %c0_14 = arith.constant 0 : index
    %21 = vector.load %arg7[%c0_13, %c0_14] : memref<256x128xbf16, #tpu.memory_space<vmem>>, vector<256x128xbf16>
    %cst_15 = arith.constant dense<0.000000e+00> : vector<256x256xf32>
    %22 = tpu.matmul %21, %20, %cst_15 {dimension_numbers = #tpu.dot_dimension_numbers<[1], [0], [0], [1], [0, 0, 1, 1], [], []>} : vector<256x128xbf16>, vector<128x256xbf16>, vector<256x256xf32> -> vector<256x256xf32>
    %c0_16 = arith.constant 0 : index
    %c0_17 = arith.constant 0 : index
    %23 = vector.load %arg8[%c0_16, %c0_17] : memref<256x1xf32, #tpu.memory_space<vmem>>, vector<256x1xf32>
    %24 = vector.broadcast %23 : vector<256x1xf32> to vector<256x256xf32>
    %25 = arith.addf %22, %24 : vector<256x256xf32>
    %cst_18 = arith.constant 2.000000e-01 : f32
    %26 = vector.broadcast %cst_18 : f32 to vector<256x256xf32>
    %27 = arith.mulf %26, %25 : vector<256x256xf32>
    %28 = arith.maximumf %25, %27 : vector<256x256xf32>
    %29 = arith.truncf %28 : vector<256x256xf32> to vector<256x256xbf16>
    %c0_19 = arith.constant 0 : index
    %c0_20 = arith.constant 0 : index
    %30 = vector.load %arg9[%c0_19, %c0_20] : memref<8x256xbf16, #tpu.memory_space<vmem>>, vector<8x256xbf16>
    %cst_21 = arith.constant dense<0.000000e+00> : vector<8x256xf32>
    %31 = tpu.matmul %30, %29, %cst_21 {dimension_numbers = #tpu.dot_dimension_numbers<[1], [0], [0], [1], [0, 0, 1, 1], [], []>} : vector<8x256xbf16>, vector<256x256xbf16>, vector<8x256xf32> -> vector<8x256xf32>
    %c0_22 = arith.constant 0 : index
    %c0_23 = arith.constant 0 : index
    %32 = vector.load %arg10[%c0_22, %c0_23] : memref<8x1xf32, #tpu.memory_space<vmem>>, vector<8x1xf32>
    %33 = vector.broadcast %32 : vector<8x1xf32> to vector<8x256xf32>
    %34 = arith.addf %31, %33 : vector<8x256xf32>
    %cst_24 = arith.constant 0.000000e+00 : f32
    %35 = vector.broadcast %cst_24 : f32 to vector<8x256xf32>
    %36 = arith.maximumf %34, %35 : vector<8x256xf32>
    %cst_25 = arith.constant dense<0xFF800000> : vector<256xf32>
    %37 = vector.multi_reduction <maximumf>, %36, %cst_25 [0] : vector<8x256xf32> to vector<256xf32>
    %38 = vector.shape_cast %37 : vector<256xf32> to vector<1x256xf32>
    %39 = vector.broadcast %38 : vector<1x256xf32> to vector<8x256xf32>
    %40 = arith.subf %36, %39 : vector<8x256xf32>
    %41 = math.exp %40 : vector<8x256xf32>
    %cst_26 = arith.constant dense<0.000000e+00> : vector<256xf32>
    %42 = vector.multi_reduction <add>, %41, %cst_26 [0] : vector<8x256xf32> to vector<256xf32>
    %43 = vector.shape_cast %42 : vector<256xf32> to vector<1x256xf32>
    %44 = tpu.reciprocal %43 {approx = true} : vector<1x256xf32> -> vector<1x256xf32>
    %45 = vector.broadcast %44 : vector<1x256xf32> to vector<8x256xf32>
    %46 = arith.mulf %41, %45 : vector<8x256xf32>
    %c0_27 = arith.constant 0 : index
    %c0_28 = arith.constant 0 : index
    %c0_29 = arith.constant 0 : index
    %47 = vector.load %arg11[%c0_27, %c0_28, %c0_29] : memref<1x8x256xf32, #tpu.memory_space<vmem>>, vector<1x8x256xf32>
    %48 = vector.shape_cast %47 : vector<1x8x256xf32> to vector<8x256xf32>
    %49 = vector.shape_cast %46 : vector<8x256xf32> to vector<1x8x256xf32>
    tpu.vector_store %arg11[%c0_27, %c0_28, %c0_29], %49 {strides = array<i32>} : memref<1x8x256xf32, #tpu.memory_space<vmem>>, vector<1x8x256xf32>,
    return
  }
  func.func @transform_0(%arg0: i32, %arg1: i32) -> (i32, i32, i32) {
    %c0_i32 = arith.constant 0 : i32
    %c0_i32_0 = arith.constant 0 : i32
    return %arg0, %c0_i32, %arg1 : i32, i32, i32
  }
  func.func @transform_1(%arg0: i32, %arg1: i32) -> (i32, i32) {
    %c0_i32 = arith.constant 0 : i32
    %c0_i32_0 = arith.constant 0 : i32
    %c0_i32_1 = arith.constant 0 : i32
    return %c0_i32, %c0_i32_0 : i32, i32
  }
  func.func @transform_2(%arg0: i32, %arg1: i32) -> (i32, i32) {
    %c0_i32 = arith.constant 0 : i32
    %c0_i32_0 = arith.constant 0 : i32
    %c0_i32_1 = arith.constant 0 : i32
    return %c0_i32, %c0_i32_0 : i32, i32
  }
  func.func @transform_3(%arg0: i32, %arg1: i32) -> (i32, i32) {
    %c0_i32 = arith.constant 0 : i32
    %c0_i32_0 = arith.constant 0 : i32
    %c0_i32_1 = arith.constant 0 : i32
    return %c0_i32, %c0_i32_0 : i32, i32
  }
  func.func @transform_4(%arg0: i32, %arg1: i32) -> (i32, i32) {
    %c0_i32 = arith.constant 0 : i32
    %c0_i32_0 = arith.constant 0 : i32
    %c0_i32_1 = arith.constant 0 : i32
    return %c0_i32, %c0_i32_0 : i32, i32
  }
  func.func @transform_5(%arg0: i32, %arg1: i32) -> (i32, i32) {
    %c0_i32 = arith.constant 0 : i32
    %c0_i32_0 = arith.constant 0 : i32
    %c0_i32_1 = arith.constant 0 : i32
    return %c0_i32, %c0_i32_0 : i32, i32
  }
  func.func @transform_6(%arg0: i32, %arg1: i32) -> (i32, i32) {
    %c0_i32 = arith.constant 0 : i32
    %c0_i32_0 = arith.constant 0 : i32
    %c0_i32_1 = arith.constant 0 : i32
    return %c0_i32, %c0_i32_0 : i32, i32
  }
  func.func @transform_7(%arg0: i32, %arg1: i32) -> (i32, i32) {
    %c0_i32 = arith.constant 0 : i32
    %c0_i32_0 = arith.constant 0 : i32
    %c0_i32_1 = arith.constant 0 : i32
    return %c0_i32, %c0_i32_0 : i32, i32
  }
  func.func @transform_8(%arg0: i32, %arg1: i32) -> (i32, i32) {
    %c0_i32 = arith.constant 0 : i32
    %c0_i32_0 = arith.constant 0 : i32
    %c0_i32_1 = arith.constant 0 : i32
    return %c0_i32, %c0_i32_0 : i32, i32
  }
  func.func @transform_9(%arg0: i32, %arg1: i32) -> (i32, i32, i32) {
    %c0_i32 = arith.constant 0 : i32
    %c0_i32_0 = arith.constant 0 : i32
    return %arg0, %c0_i32, %arg1 : i32, i32, i32
  }
}

</mosaic_0001>

<bundles_post_ra>
// kernel: tpu_custom_call.1
= control target key start
LH: loop header
LB: loop body
LE: loop exit
PB: predicated region body
PF: predicated region fallthrough
CT: control target
= control target key end

     0   :  { %s2813_s0 = inlined_call_operand.vmem [shape: f32[2,4,256], index: 0, kind: input, shape index: {}]   ;;  %s2814_s1 = inlined_call_operand.vmem [shape: bf16[64,4], index: 1, kind: input, shape index: {}]   ;;  %s2815_s2 = inlined_call_operand.vmem [shape: f32[64,1], index: 2, kind: input, shape index: {}]   ;;  %s2816_s3 = inlined_call_operand.vmem [shape: bf16[128,64], index: 3, kind: input, shape index: {}]   ;;  %s2817_s4 = inlined_call_operand.vmem [shape: f32[128,1], index: 4, kind: input, shape index: {}]   ;;  %s2818_s5 = inlined_call_operand.vmem [shape: bf16[256,128], index: 5, kind: input, shape index: {}]   ;;  %s2819_s6 = inlined_call_operand.vmem [shape: f32[256,1], index: 6, kind: input, shape index: {}]   ;;  %s2820_s7 = inlined_call_operand.vmem [shape: bf16[8,256], index: 7, kind: input, shape index: {}]   ;;  %s2821_s8 = inlined_call_operand.vmem [shape: f32[8,1], index: 8, kind: input, shape index: {}]   ;;  %s2822_s9 = inlined_call_operand.hbm [shape: f32[2,8,256], index: 9, kind: output, shape index: {}]  }
   0x1   :  { %2823 = sst [smem:[#allocation5_spill]] %s2813_s0 }
   0x2   :  { %14 = vsyncpa [#allocation3], 0 }
   0x3   :  { %16 = vsyncpa [#allocation3 + $0x1], 0  ;;  %s2171_s30 = smov 0   ;;  %s2173_s10 = smov 0  }
   0x4   :  { %s2175_s11 = smov 0   ;;  %s2177_s12 = smov 0  }
   0x5   :  { %s2179_s13 = smov 0   ;;  %s2181_s14 = smov 0  }
   0x6 LB: > { %s1778_s15 = sadd.s32 4294967295, %s2118_s14   ;;  %s1779_s16 = sadd.s32 4294967294, %s2118_s14   ;;  %s2118_s14 = sphi %s2181_s14, %s22_s14   ;;  %s2114_s13 = sphi %s2179_s13, %s2831_s13   ;;  %s2110_s12 = sphi %s2177_s12, %s2830_s12   ;;  %s2106_s11 = sphi %s2175_s11, %s2829_s11   ;;  %s2102_s10 = sphi %s2173_s10, %s2828_s10   ;;  %s2098_s30 = sphi %s2171_s30, %s2827_s30  }
   0x7   : > { %s34_s17 = sadd.s32 1, %s2114_s13  ;;  %s239_s18 = sadd.s32 1, %s2106_s11 }
   0x8   : > { %p36_p0 = scmp.ge.s32.totalorder %s34_s17, 2  ;;  %p249_p1 = scmp.ne.s32.totalorder %s2106_s11, %s2102_s10 }
   0x9   : > { %p250_p2 = scmp.eq.s32.totalorder %s1778_s15, 1  ;;  %p255_p3 = scmp.ne.s32.totalorder %s2102_s10, %s2098_s30 }
   0xa   : > { %s2833_s17 = smov (%p36_p0, %s34_s17), 0  ;;  %p256_p5 = scmp.eq.s32.totalorder %s1779_s16, 1 }
   0xb   : > { %p2211_p4 = por %p250_p2, %p249_p1  ;;  %s234_s20 = ssub.s32 %s2114_s13, %s2833_s17 }
   0xc   : > { %p1782_p6 = scmp.ge.s32.totalorder %s2118_s14, 1  ;;  %p237_p7 = scmp.eq.s32.totalorder %s234_s20, 0 }
   0xd   : > { %p2218_p8 = por %p256_p5, %p255_p3  ;;  %p311_p9 = scmp.lt.s32.totalorder %s2118_s14, 3 }
   0xe   : > { %s2224_s22 = scalar_select %p237_p7, %s2106_s11, %s239_s18  }
   0xf   : > { %p312_p10 = pnand %p1782_p6, %p311_p9 }
  0x10   : > { %p352_p11 = scmp.lt.s32.totalorder (!%p312_p10), %s2110_s12, 1  ;;  %s2826_s0 = sld [smem:[#allocation5_spill]] (!%p312_p10) }
  0x11   : > { %315 = sbr.rel (%p312_p10) target bundleno = 1086 (0x43e), region = 56  ;;  %s348_s24 = sand.u32 (!%p312_p10), 1, %s2102_s10  }
  0x12   : > { %s1783_s25 = sshll.u32 (!%p312_p10), %s348_s24, 4  ;;  %s1956_s27 = sshll.u32 (!%p312_p10), %s2110_s12, 4 }
  0x13   : > { %s350_s26 = scalar_lea.vmem (!%p312_p10), [#allocation2], %s1783_s25  ;;  %s2060_s28 = scalar_lea.hbm (!%p312_p10), %s2822_s9, 32 }
  0x14   : > { %s1699_s16 = sshll.u32 (!%p312_p10), %s350_s26, 4  ;;  %s1700_s16 = int_to_ptr.vmem [resolvable:$true] %s1699_s16 }
  0x16   : > { %v386_v0 = vld [vmem:[%s2815_s2 + $0x30] sm:$0xff]  ;;  %v384_v1 = vld [vmem:[%s2815_s2 + $0x20] sm:$0xff]  ;;  %v2120_v3 = vmov 0   ;;  %s353_s29 = scalar_select %p352_p11, %s2110_s12, 1  ;;  %v385_v5 = vld [vmem:[%s2815_s2 + $0x28] sm:$0xff]  ;;  %vm461_vm0 = vcmask 1041408  }
  0x17   : > { %v382_v2 = vld [vmem:[%s2815_s2 + $0x10] sm:$0xff]  ;;  %2031 = vset.pattern.permute.xlu2 %v2120_v3  ;;  %2030 = vset.pattern.permute.xlu1 %v2120_v3  ;;  %v387_v6 = vld [vmem:[%s2815_s2 + $0x38] sm:$0xff]  ;;  %v381_v10 = vld [vmem:[%s2815_s2 + $0x8] sm:$0xff]  ;;  %vm448_vm1 = vcmask 31744   ;;  %vm718_vm2 = vcmask 523264  }
  0x18   : > { %2029 = vset.pattern.permute.xlu0 %v2120_v3  ;;  %410 = vperm.xlu1 %2030, %v384_v1   ;;  %s1927_s15 = sshll.u32 %s353_s29, 3  ;;  %v383_v7 = vld [vmem:[%s2815_s2 + $0x18] sm:$0xff]  ;;  %v596_v13 = vld [vmem:[%s2817_s4 + $0x70] sm:$0xff]  ;;  %v380_v14 = vld [vmem:[%s2815_s2] sm:$0xff] }
  0x19   : > { %420 = vperm.xlu0 %2029, %v386_v0   ;;  %400 = vperm.xlu2 %2031, %v382_v2   ;;  %s359_s20 = scalar_lea.vmem %s2826_s0, %s1927_s15  ;;  %v1928_v17 = vld [vmem:[%s2814_s1] sm:$0xff]  ;;  %v595_v19 = vld [vmem:[%s2817_s4 + $0x68] sm:$0xff]  ;;  %v597_v20 = vld [vmem:[%s2817_s4 + $0x78] sm:$0xff]  ;;  %s1697_s15 = scalar_lea.hbm %s2822_s9, %s1956_s27 }
  0x1a   : > { %v363_v4 = vld [vmem:[%s359_s20] sm:$0xff]  ;;  %v593_v21 = vld [vmem:[%s2817_s4 + $0x58] sm:$0xff]  ;;  %v592_v23 = vld [vmem:[%s2817_s4 + $0x50] sm:$0xff]  ;;  %s1701_s18 = sshll.u32 %s1697_s15, 4  ;;  %s1684_s20 = scalar_lea.sflag [#allocation3], %s348_s24  ;;  %s1702_s18 = int_to_ptr.hbm [resolvable:$true] %s1701_s18 }
  0x1b   : > { %365 = vst [vmem:[#allocation1] ss:$2 sm:$0xff] %v363_v4  ;;  %v594_v18 = vld [vmem:[%s2817_s4 + $0x60] sm:$0xff]  ;;  %v1929_v24 = vld [vmem:[%s2814_s1 + $0x8] sm:$0xff]  ;;  %v588_v25 = vld [vmem:[%s2817_s4 + $0x30] sm:$0xff]  ;;  %s2054_s23 = sshra.s32 %s1702_s18, 4  ;;  %s2055_s23 = int_to_ptr.hbm [resolvable:$true] %s2054_s23 }
  0x1c   : > { %v590_v22 = vld [vmem:[%s2817_s4 + $0x40] sm:$0xff]  ;;  %v589_v26 = vld [vmem:[%s2817_s4 + $0x38] sm:$0xff]  ;;  %v591_v27 = vld [vmem:[%s2817_s4 + $0x48] sm:$0xff]  ;;  %s2056_s25 = scalar_lea.hbm %s2055_s23, 16  ;;  %p2061_p1 = scmp.lt.s32.totalorder %s2055_s23, %s2822_s9 }
  0x1d   : > { %v587_v28 = vld [vmem:[%s2817_s4 + $0x28] sm:$0xff]  ;;  %v584_v29 = vld [vmem:[%s2817_s4 + $0x10] sm:$0xff]  ;;  %v586_v30 = vld [vmem:[%s2817_s4 + $0x20] sm:$0xff]  ;;  %p2057_p12 = scmp.ne.s32.totalorder %s2055_s23, %s2056_s25  ;;  %p2062_p2 = scmp.lt.s32.totalorder %s2060_s28, %s2056_s25 }
  0x1e   : > { %v1930_v31 = vld [vmem:[%s2814_s1 + $0x10] sm:$0xff]  ;;  %v582_v32 = vld [vmem:[%s2817_s4] sm:$0xff]  ;;  %v583_v33 = vld [vmem:[%s2817_s4 + $0x8] sm:$0xff] }
  0x1f   : > { %v585_v34 = vld [vmem:[%s2817_s4 + $0x18] sm:$0xff]  ;;  %v983_v36 = vld [vmem:[%s2819_s6 + $0xf0] sm:$0xff]  ;;  %v965_v39 = vld [vmem:[%s2819_s6 + $0x60] sm:$0xff]  ;;  %p2058_p13 = pnand %p2057_p12, %p2211_p4  ;;  %p2063_p3 = por %p2062_p2, %p2061_p1 }
  0x20   : > { %415 = vperm.xlu1 %2030, %v385_v5   ;;  %v968_v35 = vld [vmem:[%s2819_s6 + $0x78] sm:$0xff]  ;;  %v967_v37 = vld [vmem:[%s2819_s6 + $0x70] sm:$0xff]  ;;  %v966_v40 = vld [vmem:[%s2819_s6 + $0x68] sm:$0xff] }
  0x21   : > { %425 = vperm.xlu0 %2029, %v387_v6   ;;  %405 = vperm.xlu2 %2031, %v383_v7   ;;  %v1931_v38 = vld [vmem:[%s2814_s1 + $0x18] sm:$0xff]  ;;  %v982_v42 = vld [vmem:[%s2819_s6 + $0xe8] sm:$0xff]  ;;  %v963_v43 = vld [vmem:[%s2819_s6 + $0x50] sm:$0xff]  ;;  %p2059_p0 = pneg %p2058_p13 }
  0x22   : > { %v366_v8 = vld.sshfl [vmem:[#allocation1] sm:$0xff pattern:$0x75316420]  ;;  %v367_v9 = vld.sshfl [vmem:[#allocation1 + $0x8] sm:$0xff pattern:$0x75316420] }
  0x23   : > { %v370_v11 = vpack.c.bf16 %v366_v8, %v366_v8  ;;  %v371_v12 = vpack.c.bf16 %v367_v9, %v367_v9  ;;  %v984_v41 = vld [vmem:[%s2819_s6 + $0xf8] sm:$0xff]  ;;  %v981_v44 = vld [vmem:[%s2819_s6 + $0xe0] sm:$0xff]  ;;  %v979_v45 = vld [vmem:[%s2819_s6 + $0xd0] sm:$0xff]  ;;  %p2064_p5 = pnand %p2063_p3, %p2059_p0 }
  0x24   : > { %v980_v46 = vld [vmem:[%s2819_s6 + $0xd8] sm:$0xff]  ;;  %v962_v48 = vld [vmem:[%s2819_s6 + $0x48] sm:$0xff]  ;;  %v977_v49 = vld [vmem:[%s2819_s6 + $0xc0] sm:$0xff] }
  0x25   : > { %v463_v15 = vsel %vm461_vm0, %v370_v11, 0  ;;  %v466_v16 = vsel %vm461_vm0, %v371_v12, 0  ;;  %v964_v47 = vld [vmem:[%s2819_s6 + $0x58] sm:$0xff]  ;;  %v961_v50 = vld [vmem:[%s2819_s6 + $0x40] sm:$0xff]  ;;  %v959_v51 = vld [vmem:[%s2819_s6 + $0x30] sm:$0xff] }
  0x26   : > { %475 = vmatpush.bf16.msra.mxu0 %v463_v15  ;;  %504 = vmatpush.bf16.msra.mxu1 %v466_v16  ;;  %v960_v52 = vld [vmem:[%s2819_s6 + $0x38] sm:$0xff]  ;;  %v978_v53 = vld [vmem:[%s2819_s6 + $0xc8] sm:$0xff]  ;;  %v957_v55 = vld [vmem:[%s2819_s6 + $0x20] sm:$0xff] }
  0x27   : > { %v976_v54 = vld [vmem:[%s2819_s6 + $0xb8] sm:$0xff]  ;;  %v975_v56 = vld [vmem:[%s2819_s6 + $0xb0] sm:$0xff]  ;;  %v973_v57 = vld [vmem:[%s2819_s6 + $0xa0] sm:$0xff] }
  0x28   : > { %395 = vperm.xlu1 %2030, %v381_v10   ;;  %v974_v58 = vld [vmem:[%s2819_s6 + $0xa8] sm:$0xff]  ;;  %v956_v60 = vld [vmem:[%s2819_s6 + $0x18] sm:$0xff]  ;;  %v971_v61 = vld [vmem:[%s2819_s6 + $0x90] sm:$0xff] }
  0x29   : > { %670 = vperm.xlu2 %2031, %v596_v13   ;;  %390 = vperm.xlu0 %2029, %v380_v14   ;;  %v958_v59 = vld [vmem:[%s2819_s6 + $0x28] sm:$0xff]  ;;  %v955_v62 = vld [vmem:[%s2819_s6 + $0x10] sm:$0xff]  ;;  %v953_v63 = vld [vmem:[%s2819_s6] sm:$0xff] }
  0x2a   : > { %1802 = vmatmul.msk.bf16.vlgmr.msra.gmra.mxu0 %vm448_vm1, %v1928_v17  ;;  %1806 = vmatmul.msk.bf16.vlgmr.msra.gmra.mxu1 %vm448_vm1, %v1928_v17  ;;  %v954_v0 = vld [vmem:[%s2819_s6 + $0x8] sm:$0xff]  ;;  %v972_v1 = vld [vmem:[%s2819_s6 + $0x98] sm:$0xff]  ;;  %v1580_v3 = vld [vmem:[%s2821_s8] sm:$0xff] }
  0x2b   : > { %v970_v2 = vld [vmem:[%s2819_s6 + $0x88] sm:$0xff]  ;;  %v969_v4 = vld [vmem:[%s2819_s6 + $0x80] sm:$0xff] }
  0x30   : > { %660 = vperm.xlu1 %2030, %v594_v18  }
  0x31   : > { %665 = vperm.xlu2 %2031, %v595_v19   ;;  %675 = vperm.xlu0 %2029, %v597_v20  }
  0x38   : > { %655 = vperm.xlu1 %2030, %v593_v21  }
  0x39   : > { %640 = vperm.xlu2 %2031, %v590_v22   ;;  %650 = vperm.xlu0 %2029, %v592_v23  }
  0x3a   : > { %1803 = vmatmul.msk.bf16.gmra.mxu0 %vm448_vm1, %v1929_v24  ;;  %1807 = vmatmul.msk.bf16.gmra.mxu1 %vm448_vm1, %v1929_v24 }
  0x40   : > { %630 = vperm.xlu1 %2030, %v588_v25  }
  0x41   : > { %635 = vperm.xlu2 %2031, %v589_v26   ;;  %645 = vperm.xlu0 %2029, %v591_v27  }
  0x48   : > { %625 = vperm.xlu1 %2030, %v587_v28  }
  0x49   : > { %610 = vperm.xlu2 %2031, %v584_v29   ;;  %620 = vperm.xlu0 %2029, %v586_v30  }
  0x4a   : > { %1804 = vmatmul.msk.bf16.gmra.mxu0 %vm448_vm1, %v1930_v31  ;;  %1808 = vmatmul.msk.bf16.gmra.mxu1 %vm448_vm1, %v1930_v31 }
  0x50   : > { %600 = vperm.xlu1 %2030, %v582_v32  }
  0x51   : > { %605 = vperm.xlu2 %2031, %v583_v33   ;;  %615 = vperm.xlu0 %2029, %v585_v34  }
  0x58   : > { %1062 = vperm.xlu1 %2030, %v968_v35  }
  0x59   : > { %1137 = vperm.xlu2 %2031, %v983_v36   ;;  %1057 = vperm.xlu0 %2029, %v967_v37  }
  0x5a   : > { %1805 = vmatmul.msk.bf16.gmra.mxu0 %vm448_vm1, %v1931_v38  ;;  %1809 = vmatmul.msk.bf16.gmra.mxu1 %vm448_vm1, %v1931_v38 }
  0x60   : > { %1047 = vperm.xlu1 %2030, %v965_v39  }
  0x61   : > { %1052 = vperm.xlu2 %2031, %v966_v40   ;;  %1142 = vperm.xlu0 %2029, %v984_v41  }
  0x68   : > { %1132 = vperm.xlu1 %2030, %v982_v42  }
  0x69   : > { %1037 = vperm.xlu2 %2031, %v963_v43   ;;  %1127 = vperm.xlu0 %2029, %v981_v44  }
  0x70   : > { %1117 = vperm.xlu1 %2030, %v979_v45  }
  0x71   : > { %1122 = vperm.xlu2 %2031, %v980_v46   ;;  %1042 = vperm.xlu0 %2029, %v964_v47  }
  0x73   : > { %v401_v19 = vpop.permute.xlu2 %400 }
  0x78   : > { %1032 = vperm.xlu1 %2030, %v962_v48  }
  0x79   : > { %1107 = vperm.xlu2 %2031, %v977_v49   ;;  %1027 = vperm.xlu0 %2029, %v961_v50  }
  0x7b   : > { %v406_v30 = vpop.permute.xlu2 %405 }
  0x80   : > { %1017 = vperm.xlu1 %2030, %v959_v51  }
  0x81   : > { %1022 = vperm.xlu2 %2031, %v960_v52   ;;  %1112 = vperm.xlu0 %2029, %v978_v53  }
  0x88   : > { %1102 = vperm.xlu1 %2030, %v976_v54  }
  0x89   : > { %1007 = vperm.xlu2 %2031, %v957_v55   ;;  %1097 = vperm.xlu0 %2029, %v975_v56  }
  0x8a   : > { %v411_v17 = vpop.permute.xlu1 %410 }
  0x8b   : > { %v421_v16 = vpop.permute.xlu0 %420 }
  0x90   : > { %1087 = vperm.xlu1 %2030, %v973_v57  }
  0x91   : > { %1092 = vperm.xlu2 %2031, %v974_v58   ;;  %1012 = vperm.xlu0 %2029, %v958_v59  }
  0x92   : > { %v416_v23 = vpop.permute.xlu1 %415 }
  0x93   : > { %v426_v22 = vpop.permute.xlu0 %425 }
  0x98   : > { %1002 = vperm.xlu1 %2030, %v956_v60  }
  0x99   : > { %1077 = vperm.xlu2 %2031, %v971_v61   ;;  %997 = vperm.xlu0 %2029, %v955_v62  }
  0x9a   : > { %v396_v45 = vpop.permute.xlu1 %395 }
  0x9b   : > { %v391_v46 = vpop.permute.xlu0 %390 }
  0xa0   : > { %987 = vperm.xlu1 %2030, %v953_v63  }
  0xa1   : > { %992 = vperm.xlu2 %2031, %v954_v0   ;;  %1082 = vperm.xlu0 %2029, %v972_v1  }
  0xa7   : > { %v477_v5 = vpop.f32.mrf.mxu0  ;;  %v506_v6 = vpop.f32.mrf.mxu1 }
  0xa8   : > { %1072 = vperm.xlu1 %2030, %v970_v2   ;;  %v478_v51 = vadd.f32 %v477_v5, %v391_v46  ;;  %v507_v52 = vadd.f32 %v506_v6, %v391_v46 }
  0xa9   : > { %1583 = vperm.xlu2 %2031, %v1580_v3   ;;  %1067 = vperm.xlu0 %2029, %v969_v4  }
  0xaa   : > { %v526_v6 = vmul.f32 0.2, %v478_v51 }
  0xaf   : > { %v479_v7 = vpop.f32.mrf.mxu0  ;;  %v508_v8 = vpop.f32.mrf.mxu1 }
  0xb0   : > { %v480_v53 = vadd.f32 %v479_v7, %v396_v45  ;;  %v509_v59 = vadd.f32 %v508_v8, %v396_v45  ;;  %v527_v7 = vmul.f32 0.2, %v507_v52 }
  0xb2   : > { %v528_v3 = vmul.f32 0.2, %v480_v53 }
  0xb7   : > { %v482_v9 = vpop.f32.mrf.mxu0  ;;  %v511_v10 = vpop.f32.mrf.mxu1 }
  0xb8   : > { %v483_v34 = vadd.f32 %v482_v9, %v401_v19  ;;  %v512_v41 = vadd.f32 %v511_v10, %v401_v19  ;;  %v529_v9 = vmul.f32 0.2, %v509_v59 }
  0xba   : > { %v530_v60 = vmul.f32 0.2, %v483_v34  ;;  %v531_v61 = vmul.f32 0.2, %v512_v41 }
  0xbc   : > { %v546_v10 = vmax.f32 %v483_v34, %v530_v60 }
  0xbf   : > { %v484_v11 = vpop.f32.mrf.mxu0  ;;  %v513_v12 = vpop.f32.mrf.mxu1 }
  0xc0   : > { %v485_v35 = vadd.f32 %v484_v11, %v406_v30  ;;  %v514_v42 = vadd.f32 %v513_v12, %v406_v30  ;;  %v547_v11 = vmax.f32 %v512_v41, %v531_v61 }
  0xc2   : > { %v532_v54 = vmul.f32 0.2, %v485_v35  ;;  %v533_v62 = vmul.f32 0.2, %v514_v42 }
  0xc4   : > { %v548_v5 = vmax.f32 %v485_v35, %v532_v54  ;;  %v549_v8 = vmax.f32 %v514_v42, %v533_v62 }
  0xc7   : > { %v487_v13 = vpop.f32.mrf.mxu0  ;;  %v516_v14 = vpop.f32.mrf.mxu1 }
  0xc8   : > { %v488_v27 = vadd.f32 %v487_v13, %v411_v17  ;;  %v517_v28 = vadd.f32 %v516_v14, %v411_v17  ;;  %v560_v13 = vpack.c.bf16 %v548_v5, %v546_v10  ;;  %v544_v14 = vmax.f32 %v480_v53, %v528_v3 }
  0xc9   : > { %v561_v17 = vpack.c.bf16 %v549_v8, %v547_v11 }
  0xca   : > { %v534_v43 = vmul.f32 0.2, %v488_v27  ;;  %v535_v44 = vmul.f32 0.2, %v517_v28 }
  0xcc   : > { %v550_v63 = vmax.f32 %v488_v27, %v534_v43  ;;  %v551_v0 = vmax.f32 %v517_v28, %v535_v44  ;;  %v1938_v27 = vld [vmem:[%s2816_s3 + $0x30] sm:$0xff]  ;;  %v1939_v28 = vld [vmem:[%s2816_s3 + $0x38] sm:$0xff] }
  0xcf   : > { %v489_v15 = vpop.f32.mrf.mxu0  ;;  %v518_v18 = vpop.f32.mrf.mxu1 }
  0xd0   : > { %v490_v25 = vadd.f32 %v489_v15, %v416_v23  ;;  %v519_v31 = vadd.f32 %v518_v18, %v416_v23  ;;  %v542_v15 = vmax.f32 %v478_v51, %v526_v6  ;;  %v545_v18 = vmax.f32 %v509_v59, %v529_v9  ;;  %v1934_v23 = vld [vmem:[%s2816_s3 + $0x10] sm:$0xff] }
  0xd2   : > { %v536_v37 = vmul.f32 0.2, %v490_v25  ;;  %v537_v47 = vmul.f32 0.2, %v519_v31  ;;  %v558_v19 = vpack.c.bf16 %v544_v14, %v542_v15 }
  0xd4   : > { %v552_v58 = vmax.f32 %v490_v25, %v536_v37  ;;  %v553_v2 = vmax.f32 %v519_v31, %v537_v47  ;;  %v1936_v25 = vld [vmem:[%s2816_s3 + $0x20] sm:$0xff]  ;;  %v2466_v31 = vpop.permute.xlu0 %675 }
  0xd6   : > { %v562_v4 = vpack.c.bf16 %v552_v58, %v550_v63  ;;  %v563_v12 = vpack.c.bf16 %v553_v2, %v551_v0 }
  0xd7   : > { %v492_v20 = vpop.f32.mrf.mxu0  ;;  %v521_v21 = vpop.f32.mrf.mxu1 }
  0xd8   : > { %v493_v24 = vadd.f32 %v492_v20, %v421_v16  ;;  %v522_v26 = vadd.f32 %v521_v21, %v421_v16  ;;  %v543_v16 = vmax.f32 %v507_v52, %v527_v7  ;;  %v1932_v20 = vld [vmem:[%s2816_s3] sm:$0xff] }
  0xda   : > { %v538_v32 = vmul.f32 0.2, %v493_v24  ;;  %v539_v38 = vmul.f32 0.2, %v522_v26  ;;  %v559_v21 = vpack.c.bf16 %v545_v18, %v543_v16 }
  0xdc   : > { %v554_v49 = vmax.f32 %v493_v24, %v538_v32  ;;  %v555_v56 = vmax.f32 %v522_v26, %v539_v38  ;;  %v1935_v24 = vld [vmem:[%s2816_s3 + $0x18] sm:$0xff]  ;;  %v1937_v26 = vld [vmem:[%s2816_s3 + $0x28] sm:$0xff]  ;;  %v2474_v35 = vpop.permute.xlu0 %650 }
  0xdf   : > { %v494_v29 = vpop.f32.mrf.mxu0  ;;  %v523_v36 = vpop.f32.mrf.mxu1 }
  0xe0   : > { %v495_v33 = vadd.f32 %v494_v29, %v426_v22  ;;  %v524_v40 = vadd.f32 %v523_v36, %v426_v22  ;;  %v1933_v22 = vld [vmem:[%s2816_s3 + $0x8] sm:$0xff] }
  0xe2   : > { %v540_v39 = vmul.f32 0.2, %v495_v33  ;;  %v541_v48 = vmul.f32 0.2, %v524_v40 }
  0xe4   : > { %v556_v50 = vmax.f32 %v495_v33, %v540_v39  ;;  %v557_v57 = vmax.f32 %v524_v40, %v541_v48  ;;  %v2470_v33 = vpop.permute.xlu1 %660  ;;  %v671_v40 = vpop.permute.xlu2 %670 }
  0xe5   : > { %v2484_v41 = vpop.permute.xlu0 %645 }
  0xe6   : > { %v564_v55 = vpack.c.bf16 %v556_v50, %v554_v49  ;;  %v565_v1 = vpack.c.bf16 %v557_v57, %v555_v56 }
  0xe8   : > { %747 = vmatpush.bf16.msra.mxu2 %v564_v55  ;;  %796 = vmatpush.bf16.msra.mxu3 %v565_v1 }
  0xec   : > { %748 = vmatpush.bf16.msra.mxu2 %v562_v4  ;;  %797 = vmatpush.bf16.msra.mxu3 %v563_v12  ;;  %v2480_v38 = vpop.permute.xlu1 %655  ;;  %v666_v46 = vpop.permute.xlu2 %665 }
  0xed   : > { %v621_v47 = vpop.permute.xlu0 %620 }
  0xf0   : > { %749 = vmatpush.bf16.msra.mxu2 %v560_v13  ;;  %798 = vmatpush.bf16.msra.mxu3 %v561_v17 }
  0xf4   : > { %750 = vmatpush.bf16.msra.mxu2 %v558_v19  ;;  %799 = vmatpush.bf16.msra.mxu3 %v559_v21  ;;  %v631_v43 = vpop.permute.xlu1 %630  ;;  %v2488_v61 = vpop.permute.xlu2 %640 }
  0xf7   : > { %1842 = vmatmul.msk.bf16.vlgmr.msra.gmra.mxu2 %vm718_vm2, %v1932_v20  ;;  %1850 = vmatmul.msk.bf16.vlgmr.msra.gmra.mxu3 %vm718_vm2, %v1932_v20 }
  0xfc   : > { %v626_v50 = vpop.permute.xlu1 %625  ;;  %v636_v6 = vpop.permute.xlu2 %635 }
 0x107   : > { %1843 = vmatmul.msk.bf16.gmra.mxu2 %vm718_vm2, %v1933_v22  ;;  %1851 = vmatmul.msk.bf16.gmra.mxu3 %vm718_vm2, %v1933_v22 }
 0x117   : > { %1844 = vmatmul.msk.bf16.gmra.mxu2 %vm718_vm2, %v1934_v23  ;;  %1852 = vmatmul.msk.bf16.gmra.mxu3 %vm718_vm2, %v1934_v23 }
 0x127   : > { %1845 = vmatmul.msk.bf16.gmra.mxu2 %vm718_vm2, %v1935_v24  ;;  %1853 = vmatmul.msk.bf16.gmra.mxu3 %vm718_vm2, %v1935_v24 }
 0x137   : > { %1846 = vmatmul.msk.bf16.gmra.mxu2 %vm718_vm2, %v1936_v25  ;;  %1854 = vmatmul.msk.bf16.gmra.mxu3 %vm718_vm2, %v1936_v25 }
 0x147   : > { %1847 = vmatmul.msk.bf16.gmra.mxu2 %vm718_vm2, %v1937_v26  ;;  %1855 = vmatmul.msk.bf16.gmra.mxu3 %vm718_vm2, %v1937_v26 }
 0x157   : > { %1848 = vmatmul.msk.bf16.gmra.mxu2 %vm718_vm2, %v1938_v27  ;;  %1856 = vmatmul.msk.bf16.gmra.mxu3 %vm718_vm2, %v1938_v27 }
 0x167   : > { %1849 = vmatmul.msk.bf16.gmra.mxu2 %vm718_vm2, %v1939_v28  ;;  %1857 = vmatmul.msk.bf16.gmra.mxu3 %vm718_vm2, %v1939_v28 }
 0x17a   : > { %v2462_v29 = vpop.f32.mrf.mxu2  ;;  %v2464_v30 = vpop.f32.mrf.mxu3 }
 0x182   : > { %v2468_v32 = vpop.f32.mrf.mxu2  ;;  %v2472_v34 = vpop.f32.mrf.mxu3 }
 0x18a   : > { %v2476_v36 = vpop.f32.mrf.mxu2  ;;  %v2478_v37 = vpop.f32.mrf.mxu3 }
 0x192   : > { %v2482_v39 = vpop.f32.mrf.mxu2  ;;  %v2486_v42 = vpop.f32.mrf.mxu3 }
 0x19a   : > { %v762_v44 = vpop.f32.mrf.mxu2  ;;  %v811_v45 = vpop.f32.mrf.mxu3 }
 0x19b   : > { %v763_v48 = vadd.f32 %v762_v44, %v621_v47  ;;  %v812_v49 = vadd.f32 %v811_v45, %v621_v47 }
 0x19d   : > { %v849_v52 = vmul.f32 0.2, %v763_v48  ;;  %v850_v55 = vmul.f32 0.2, %v812_v49 }
 0x19f   : > { %v881_v58 = vmax.f32 %v763_v48, %v849_v52  ;;  %v882_v62 = vmax.f32 %v812_v49, %v850_v55 }
 0x1a2   : > { %v764_v51 = vpop.f32.mrf.mxu2  ;;  %v813_v54 = vpop.f32.mrf.mxu3 }
 0x1a3   : > { %v765_v53 = vadd.f32 %v764_v51, %v626_v50  ;;  %v814_v57 = vadd.f32 %v813_v54, %v626_v50 }
 0x1a5   : > { %v851_v56 = vmul.f32 0.2, %v765_v53  ;;  %v852_v60 = vmul.f32 0.2, %v814_v57 }
 0x1a7   : > { %v883_v59 = vmax.f32 %v765_v53, %v851_v56  ;;  %v884_v63 = vmax.f32 %v814_v57, %v852_v60 }
 0x1a9   : > { %v2490_v0 = vpack.c.bf16 %v883_v59, %v881_v58  ;;  %v2492_v2 = vpack.c.bf16 %v884_v63, %v882_v62 }
 0x1aa   : > { %v767_v1 = vpop.f32.mrf.mxu2  ;;  %v816_v3 = vpop.f32.mrf.mxu3 }
 0x1ab   : > { %v768_v4 = vadd.f32 %v767_v1, %v631_v43  ;;  %v817_v5 = vadd.f32 %v816_v3, %v631_v43 }
 0x1ad   : > { %v853_v9 = vmul.f32 0.2, %v768_v4  ;;  %v854_v12 = vmul.f32 0.2, %v817_v5 }
 0x1af   : > { %v885_v14 = vmax.f32 %v768_v4, %v853_v9  ;;  %v886_v17 = vmax.f32 %v817_v5, %v854_v12 }
 0x1b2   : > { %v769_v7 = vpop.f32.mrf.mxu2  ;;  %v818_v11 = vpop.f32.mrf.mxu3 }
 0x1b3   : > { %v770_v10 = vadd.f32 %v769_v7, %v636_v6  ;;  %v819_v13 = vadd.f32 %v818_v11, %v636_v6 }
 0x1b5   : > { %v855_v8 = vmul.f32 0.2, %v770_v10  ;;  %v856_v16 = vmul.f32 0.2, %v819_v13 }
 0x1b7   : > { %v887_v15 = vmax.f32 %v770_v10, %v855_v8  ;;  %v888_v18 = vmax.f32 %v819_v13, %v856_v16 }
 0x1b9   : > { %v2494_v19 = vpack.c.bf16 %v887_v15, %v885_v14  ;;  %v2496_v21 = vpack.c.bf16 %v888_v18, %v886_v17 }
 0x1ba   : > { %v772_v20 = vpop.f32.mrf.mxu2  ;;  %v821_v22 = vpop.f32.mrf.mxu3 }
 0x1c2   : > { %v774_v23 = vpop.f32.mrf.mxu2  ;;  %v823_v24 = vpop.f32.mrf.mxu3 }
 0x1c3   : > { %v775_v10 = vadd.f32 %v774_v23, %v2484_v41  ;;  %v824_v16 = vadd.f32 %v823_v24, %v2484_v41  ;;  %v822_v23 = vadd.f32 %v821_v22, %v2488_v61 }
 0x1ca   : > { %v777_v25 = vpop.f32.mrf.mxu2  ;;  %v826_v26 = vpop.f32.mrf.mxu3 }
 0x1cb   : > { %v778_v4 = vadd.f32 %v777_v25, %v2474_v35  ;;  %v827_v11 = vadd.f32 %v826_v26, %v2474_v35  ;;  %v859_v35 = vmul.f32 0.2, %v775_v10 }
 0x1cd   : > { %v862_v26 = vmul.f32 0.2, %v827_v11 }
 0x1d2   : > { %v779_v27 = vpop.f32.mrf.mxu2  ;;  %v828_v28 = vpop.f32.mrf.mxu3 }
 0x1d3   : > { %v780_v58 = vadd.f32 %v779_v27, %v2480_v38 }
 0x1da   : > { %v782_v43 = vpop.f32.mrf.mxu2  ;;  %v831_v44 = vpop.f32.mrf.mxu3 }
 0x1db   : > { %v783_v53 = vadd.f32 %v782_v43, %v2470_v33  ;;  %v832_v59 = vadd.f32 %v831_v44, %v2470_v33  ;;  %v863_v33 = vmul.f32 0.2, %v780_v58 }
 0x1dd   : > { %v865_v5 = vmul.f32 0.2, %v783_v53  ;;  %v866_v12 = vmul.f32 0.2, %v832_v59 }
 0x1df   : > { %v897_v18 = vmax.f32 %v783_v53, %v865_v5  ;;  %v898_v43 = vmax.f32 %v832_v59, %v866_v12 }
 0x1e2   : > { %v784_v45 = vpop.f32.mrf.mxu2  ;;  %v833_v47 = vpop.f32.mrf.mxu3 }
 0x1e3   : > { %v785_v51 = vadd.f32 %v784_v45, %v666_v46  ;;  %v834_v55 = vadd.f32 %v833_v47, %v666_v46  ;;  %v611_v45 = vpop.permute.xlu2 %610  ;;  %v860_v47 = vmul.f32 0.2, %v824_v16 }
 0x1e5   : > { %v867_v62 = vmul.f32 0.2, %v785_v51  ;;  %v868_v6 = vmul.f32 0.2, %v834_v55 }
 0x1e7   : > { %v899_v8 = vmax.f32 %v785_v51, %v867_v62  ;;  %v900_v25 = vmax.f32 %v834_v55, %v868_v6  ;;  %v894_v51 = vmax.f32 %v827_v11, %v862_v26  ;;  %v1944_v26 = vld [vmem:[%s2818_s5 + $0x20] sm:$0xff] }
 0x1e9   : > { %v917_v44 = vpack.c.bf16 %v899_v8, %v897_v18  ;;  %v1943_v18 = vld [vmem:[%s2818_s5 + $0x18] sm:$0xff] }
 0x1ea   : > { %v787_v48 = vpop.f32.mrf.mxu2  ;;  %v836_v49 = vpop.f32.mrf.mxu3 }
 0x1eb   : > { %v788_v50 = vadd.f32 %v787_v48, %v671_v40  ;;  %v837_v52 = vadd.f32 %v836_v49, %v671_v40  ;;  %v829_v40 = vadd.f32 %v828_v28, %v2480_v38  ;;  %v861_v38 = vmul.f32 0.2, %v778_v4  ;;  %v606_v62 = vpop.permute.xlu2 %605 }
 0x1ec   : > { %v895_v28 = vmax.f32 %v780_v58, %v863_v33  ;;  %v918_v48 = vpack.c.bf16 %v900_v25, %v898_v43  ;;  %v858_v49 = vmul.f32 0.2, %v822_v23  ;;  %v758_v58 = vadd.f32 %v2476_v36, %v611_v45  ;;  %v1955_v25 = vld [vmem:[%s2818_s5 + $0x78] sm:$0xff] }
 0x1ed   : > { %v869_v56 = vmul.f32 0.2, %v788_v50  ;;  %v870_v63 = vmul.f32 0.2, %v837_v52  ;;  %v864_v17 = vmul.f32 0.2, %v829_v40  ;;  %v893_v41 = vmax.f32 %v778_v4, %v861_v38 }
 0x1ee   : > { %v845_v5 = vmul.f32 0.2, %v758_v58 }
 0x1ef   : > { %v901_v46 = vmax.f32 %v788_v50, %v869_v56  ;;  %v902_v13 = vmax.f32 %v837_v52, %v870_v63  ;;  %v896_v24 = vmax.f32 %v829_v40, %v864_v17  ;;  %v891_v50 = vmax.f32 %v775_v10, %v859_v35 }
 0x1f0   : > { %v892_v52 = vmax.f32 %v824_v16, %v860_v47  ;;  %v890_v56 = vmax.f32 %v822_v23, %v858_v49  ;;  %v755_v63 = vadd.f32 %v2468_v32, %v606_v62  ;;  %v804_v40 = vadd.f32 %v2472_v34, %v606_v62  ;;  %v1954_v16 = vld [vmem:[%s2818_s5 + $0x70] sm:$0xff]  ;;  %v1945_v47 = vld [vmem:[%s2818_s5 + $0x28] sm:$0xff] }
 0x1f1   : > { %v916_v53 = vpack.c.bf16 %v896_v24, %v894_v51 }
 0x1f2   : > { %v789_v54 = vpop.f32.mrf.mxu2  ;;  %v838_v60 = vpop.f32.mrf.mxu3  ;;  %v843_v6 = vmul.f32 0.2, %v755_v63 }
 0x1f3   : > { %v790_v57 = vadd.f32 %v789_v54, %v2466_v31  ;;  %v839_v3 = vadd.f32 %v838_v60, %v2466_v31  ;;  %v773_v31 = vadd.f32 %v772_v20, %v2488_v61  ;;  %v915_v61 = vpack.c.bf16 %v895_v28, %v893_v41  ;;  %v616_v54 = vpop.permute.xlu0 %615  ;;  %v2546_v17 = vpop.permute.xlu2 %1137 }
 0x1f4   : > { %v760_v55 = vadd.f32 %v2482_v39, %v616_v54  ;;  %v809_v59 = vadd.f32 %v2486_v42, %v616_v54  ;;  %v914_v60 = vpack.c.bf16 %v892_v52, %v890_v56  ;;  %v601_v39 = vpop.permute.xlu1 %600  ;;  %v1947_v54 = vld [vmem:[%s2818_s5 + $0x38] sm:$0xff] }
 0x1f5   : > { %v871_v1 = vmul.f32 0.2, %v790_v57  ;;  %v872_v9 = vmul.f32 0.2, %v839_v3  ;;  %v857_v20 = vmul.f32 0.2, %v773_v31  ;;  %v753_v4 = vadd.f32 %v2462_v29, %v601_v39 }
 0x1f6   : > { %v848_v36 = vmul.f32 0.2, %v809_v59  ;;  %v802_v42 = vadd.f32 %v2464_v30, %v601_v39  ;;  %v877_v29 = vmax.f32 %v758_v58, %v845_v5 }
 0x1f7   : > { %v903_v7 = vmax.f32 %v790_v57, %v871_v1  ;;  %v904_v14 = vmax.f32 %v839_v3, %v872_v9  ;;  %v889_v22 = vmax.f32 %v773_v31, %v857_v20  ;;  %v807_v1 = vadd.f32 %v2478_v37, %v611_v45  ;;  %v1942_v31 = vld [vmem:[%s2818_s5 + $0x10] sm:$0xff] }
 0x1f8   : > { %v847_v3 = vmul.f32 0.2, %v760_v55  ;;  %v880_v34 = vmax.f32 %v809_v59, %v848_v36  ;;  %v842_v9 = vmul.f32 0.2, %v802_v42 }
 0x1f9   : > { %v919_v15 = vpack.c.bf16 %v903_v7, %v901_v46  ;;  %v920_v27 = vpack.c.bf16 %v904_v14, %v902_v13  ;;  %v913_v57 = vpack.c.bf16 %v891_v50, %v889_v22  ;;  %v846_v32 = vmul.f32 0.2, %v807_v1  ;;  %v1952_v13 = vld [vmem:[%s2818_s5 + $0x60] sm:$0xff]  ;;  %v1941_v14 = vld [vmem:[%s2818_s5 + $0x8] sm:$0xff]  ;;  %v1946_v50 = vld [vmem:[%s2818_s5 + $0x30] sm:$0xff] }
 0x1fa   : > { %v879_v37 = vmax.f32 %v760_v55, %v847_v3  ;;  %v841_v46 = vmul.f32 0.2, %v753_v4  ;;  %v844_v7 = vmul.f32 0.2, %v804_v40  ;;  %v874_v12 = vmax.f32 %v802_v42, %v842_v9 }
 0x1fb   : > { %1241 = vmatpush.bf16.msrb.mxu0 %v919_v15  ;;  %1957 = vmatpush.bf16.msrb.mxu2 %v919_v15  ;;  %v878_v10 = vmax.f32 %v807_v1, %v846_v32  ;;  %v1953_v15 = vld [vmem:[%s2818_s5 + $0x68] sm:$0xff]  ;;  %v2556_v23 = vpop.permute.xlu2 %1052  ;;  %v2565_v43 = vpop.permute.xlu0 %1057 }
 0x1fc   : > { %1330 = vmatpush.bf16.msrb.mxu1 %v920_v27  ;;  %1965 = vmatpush.bf16.msrb.mxu3 %v920_v27  ;;  %v907_v30 = vpack.c.bf16 %v879_v37, %v877_v29  ;;  %v873_v11 = vmax.f32 %v753_v4, %v841_v46  ;;  %v876_v33 = vmax.f32 %v804_v40, %v844_v7  ;;  %v2544_v38 = vpop.permute.xlu1 %1062 }
 0x1ff   : > { %1242 = vmatpush.bf16.msrb.mxu0 %v917_v44  ;;  %1958 = vmatpush.bf16.msrb.mxu2 %v917_v44 }
 0x200   : > { %1331 = vmatpush.bf16.msrb.mxu1 %v918_v48  ;;  %1966 = vmatpush.bf16.msrb.mxu3 %v918_v48 }
 0x203   : > { %1243 = vmatpush.bf16.msrb.mxu0 %v915_v61  ;;  %1959 = vmatpush.bf16.msrb.mxu2 %v915_v61  ;;  %v2563_v28 = vpop.permute.xlu2 %1037  ;;  %v2571_v20 = vpop.permute.xlu0 %1142 }
 0x204   : > { %1332 = vmatpush.bf16.msrb.mxu1 %v916_v53  ;;  %1967 = vmatpush.bf16.msrb.mxu3 %v916_v53  ;;  %v2554_v27 = vpop.permute.xlu1 %1047 }
 0x207   : > { %1244 = vmatpush.bf16.msrb.mxu0 %v913_v57  ;;  %1960 = vmatpush.bf16.msrb.mxu2 %v913_v57 }
 0x208   : > { %1333 = vmatpush.bf16.msrb.mxu1 %v914_v60  ;;  %1968 = vmatpush.bf16.msrb.mxu3 %v914_v60  ;;  %v1948_v60 = vld [vmem:[%s2818_s5 + $0x40] sm:$0xff] }
 0x20b   : > { %1245 = vmatpush.bf16.msrb.mxu0 %v2494_v19  ;;  %1961 = vmatpush.bf16.msrb.mxu2 %v2494_v19  ;;  %v875_v19 = vmax.f32 %v755_v63, %v843_v6  ;;  %v2569_v45 = vpop.permute.xlu2 %1122  ;;  %v2580_v48 = vpop.permute.xlu0 %1127 }
 0x20c   : > { %1334 = vmatpush.bf16.msrb.mxu1 %v2496_v21  ;;  %1969 = vmatpush.bf16.msrb.mxu3 %v2496_v21  ;;  %v908_v21 = vpack.c.bf16 %v880_v34, %v878_v10  ;;  %v2558_v35 = vpop.permute.xlu1 %1132 }
 0x20d   : > { %v905_v8 = vpack.c.bf16 %v875_v19, %v873_v11 }
 0x20f   : > { %1246 = vmatpush.bf16.msrb.mxu0 %v2490_v0  ;;  %1962 = vmatpush.bf16.msrb.mxu2 %v2490_v0  ;;  %v1940_v0 = vld [vmem:[%s2818_s5] sm:$0xff] }
 0x210   : > { %1335 = vmatpush.bf16.msrb.mxu1 %v2492_v2  ;;  %1970 = vmatpush.bf16.msrb.mxu3 %v2492_v2  ;;  %v906_v2 = vpack.c.bf16 %v876_v33, %v874_v12 }
 0x213   : > { %1247 = vmatpush.bf16.msrb.mxu0 %v907_v30  ;;  %1963 = vmatpush.bf16.msrb.mxu2 %v907_v30  ;;  %v2578_v24 = vpop.permute.xlu2 %1107  ;;  %v2589_v61 = vpop.permute.xlu0 %1042 }
 0x214   : > { %1336 = vmatpush.bf16.msrb.mxu1 %v908_v21  ;;  %1971 = vmatpush.bf16.msrb.mxu3 %v908_v21  ;;  %v2567_v44 = vpop.permute.xlu1 %1117  ;;  %v1949_v21 = vld [vmem:[%s2818_s5 + $0x48] sm:$0xff] }
 0x217   : > { %1248 = vmatpush.bf16.msrb.mxu0 %v905_v8  ;;  %1964 = vmatpush.bf16.msrb.mxu2 %v905_v8 }
 0x218   : > { %1337 = vmatpush.bf16.msrb.mxu1 %v906_v2  ;;  %1972 = vmatpush.bf16.msrb.mxu3 %v906_v2 }
 0x21a   : > { %1249 = vmatmul.bf16.vlgmr.msrb.gmra.mxu0 %v1940_v0  ;;  %1309 = vmatmul.bf16.vlgmr.msrb.gmra.mxu2 %v1952_v13 }
 0x21b   : > { %1338 = vmatmul.bf16.vlgmr.msrb.gmra.mxu1 %v1940_v0  ;;  %1398 = vmatmul.bf16.vlgmr.msrb.gmra.mxu3 %v1952_v13  ;;  %v2587_v51 = vpop.permute.xlu2 %1022  ;;  %v2595_v53 = vpop.permute.xlu0 %1027 }
 0x21c   : > { %v2576_v41 = vpop.permute.xlu1 %1032 }
 0x223   : > { %v2593_v52 = vpop.permute.xlu2 %1007  ;;  %v2604_v57 = vpop.permute.xlu0 %1112 }
 0x224   : > { %v2582_v49 = vpop.permute.xlu1 %1017 }
 0x22a   : > { %1254 = vmatmul.bf16.gmra.mxu0 %v1941_v14  ;;  %1314 = vmatmul.bf16.gmra.mxu2 %v1953_v15 }
 0x22b   : > { %1343 = vmatmul.bf16.gmra.mxu1 %v1941_v14  ;;  %1403 = vmatmul.bf16.gmra.mxu3 %v1953_v15  ;;  %v2602_v56 = vpop.permute.xlu2 %1092  ;;  %v2611_v62 = vpop.permute.xlu0 %1097 }
 0x22c   : > { %v2591_v22 = vpop.permute.xlu1 %1102 }
 0x233   : > { %v2606_v59 = vpop.permute.xlu2 %1077  ;;  %v1013_v32 = vpop.permute.xlu0 %1012 }
 0x234   : > { %v2600_v55 = vpop.permute.xlu1 %1087 }
 0x23a   : > { %1259 = vmatmul.bf16.gmra.mxu0 %v1942_v31  ;;  %1319 = vmatmul.bf16.gmra.mxu2 %v1954_v16 }
 0x23b   : > { %1348 = vmatmul.bf16.gmra.mxu1 %v1942_v31  ;;  %1408 = vmatmul.bf16.gmra.mxu3 %v1954_v16  ;;  %v993_v5 = vpop.permute.xlu2 %992  ;;  %v998_v13 = vpop.permute.xlu0 %997 }
 0x23c   : > { %v1003_v58 = vpop.permute.xlu1 %1002 }
 0x244   : > { %v988_v3 = vpop.permute.xlu1 %987 }
 0x24a   : > { %1264 = vmatmul.bf16.gmra.mxu0 %v1943_v18  ;;  %1324 = vmatmul.bf16.gmra.mxu2 %v1955_v25 }
 0x24b   : > { %1353 = vmatmul.bf16.gmra.mxu1 %v1943_v18  ;;  %1413 = vmatmul.bf16.gmra.mxu3 %v1955_v25 }
 0x25a   : > { %1269 = vmatmul.bf16.gmra.mxu0 %v1944_v26 }
 0x25b   : > { %1358 = vmatmul.bf16.gmra.mxu1 %v1944_v26 }
 0x26a   : > { %1274 = vmatmul.bf16.gmra.mxu0 %v1945_v47 }
 0x26b   : > { %1363 = vmatmul.bf16.gmra.mxu1 %v1945_v47 }
 0x27a   : > { %1279 = vmatmul.bf16.gmra.mxu0 %v1946_v50 }
 0x27b   : > { %1368 = vmatmul.bf16.gmra.mxu1 %v1946_v50 }
 0x28a   : > { %1284 = vmatmul.bf16.gmra.mxu0 %v1947_v54 }
 0x28b   : > { %1373 = vmatmul.bf16.gmra.mxu1 %v1947_v54 }
 0x297   : > { %v1250_v63 = vpop.f32.mrf.mxu0 }
 0x298   : > { %v1339_v1 = vpop.f32.mrf.mxu1  ;;  %v1251_v39 = vadd.f32 %v1250_v63, %v988_v3 }
 0x299   : > { %v1340_v40 = vadd.f32 %v1339_v1, %v988_v3 }
 0x29a   : > { %1289 = vmatmul.bf16.gmra.mxu0 %v1948_v60  ;;  %v1419_v42 = vmul.f32 0.2, %v1251_v39 }
 0x29b   : > { %1378 = vmatmul.bf16.gmra.mxu1 %v1948_v60  ;;  %v1420_v46 = vmul.f32 0.2, %v1340_v40 }
 0x29c   : > { %v1483_v34 = vmax.f32 %v1251_v39, %v1419_v42 }
 0x29d   : > { %v2613_v4 = vpop.f32.mrf.mxu2  ;;  %v1484_v19 = vmax.f32 %v1340_v40, %v1420_v46  ;;  %v1950_v40 = vld [vmem:[%s2818_s5 + $0x50] sm:$0xff] }
 0x29f   : > { %v1252_v36 = vpop.f32.mrf.mxu0 }
 0x2a0   : > { %v1253_v6 = vadd.f32 %v1252_v36, %v993_v5  ;;  %v1341_v37 = vpop.f32.mrf.mxu1 }
 0x2a1   : > { %v1342_v29 = vadd.f32 %v1341_v37, %v993_v5 }
 0x2a2   : > { %v1421_v7 = vmul.f32 0.2, %v1253_v6 }
 0x2a3   : > { %v1422_v10 = vmul.f32 0.2, %v1342_v29 }
 0x2a4   : > { %v1485_v9 = vmax.f32 %v1253_v6, %v1421_v7 }
 0x2a5   : > { %v2615_v30 = vpop.f32.mrf.mxu2  ;;  %v1486_v11 = vmax.f32 %v1342_v29, %v1422_v10 }
 0x2a6   : > { %v2620_v33 = vpack.c.bf16 %v1485_v9, %v1483_v34 }
 0x2a7   : > { %v1255_v12 = vpop.f32.mrf.mxu0  ;;  %v2622_v8 = vpack.c.bf16 %v1486_v11, %v1484_v19 }
 0x2a8   : > { %v1344_v0 = vpop.f32.mrf.mxu1  ;;  %v1256_v2 = vadd.f32 %v1255_v12, %v998_v13 }
 0x2a9   : > { %v1345_v15 = vadd.f32 %v1344_v0, %v998_v13 }
 0x2aa   : > { %1294 = vmatmul.bf16.gmra.mxu0 %v1949_v21  ;;  %v1423_v16 = vmul.f32 0.2, %v1256_v2 }
 0x2ab   : > { %1383 = vmatmul.bf16.gmra.mxu1 %v1949_v21  ;;  %v1424_v26 = vmul.f32 0.2, %v1345_v15 }
 0x2ac   : > { %v1487_v54 = vmax.f32 %v1256_v2, %v1423_v16 }
 0x2ad   : > { %v2624_v14 = vpop.f32.mrf.mxu2  ;;  %v1488_v3 = vmax.f32 %v1345_v15, %v1424_v26 }
 0x2af   : > { %v1257_v31 = vpop.f32.mrf.mxu0 }
 0x2b0   : > { %v1258_v18 = vadd.f32 %v1257_v31, %v1003_v58  ;;  %v1346_v25 = vpop.f32.mrf.mxu1  ;;  %v1951_v31 = vld [vmem:[%s2818_s5 + $0x58] sm:$0xff] }
 0x2b1   : > { %v1347_v50 = vadd.f32 %v1346_v25, %v1003_v58 }
 0x2b2   : > { %v1425_v47 = vmul.f32 0.2, %v1258_v18 }
 0x2b3   : > { %v1426_v63 = vmul.f32 0.2, %v1347_v50 }
 0x2b4   : > { %v1489_v60 = vmax.f32 %v1258_v18, %v1425_v47 }
 0x2b5   : > { %v1317_v1 = vpop.f32.mrf.mxu2  ;;  %v1490_v39 = vmax.f32 %v1347_v50, %v1426_v63 }
 0x2b6   : > { %v2629_v5 = vpack.c.bf16 %v1489_v60, %v1487_v54 }
 0x2b7   : > { %v1260_v36 = vpop.f32.mrf.mxu0  ;;  %v2631_v42 = vpack.c.bf16 %v1490_v39, %v1488_v3 }
 0x2b8   : > { %v1349_v6 = vpop.f32.mrf.mxu1  ;;  %v1261_v37 = vadd.f32 %v1260_v36, %v2593_v52 }
 0x2b9   : > { %v1350_v46 = vadd.f32 %v1349_v6, %v2593_v52 }
 0x2ba   : > { %1299 = vmatmul.bf16.gmra.mxu0 %v1950_v40  ;;  %v1427_v29 = vmul.f32 0.2, %v1261_v37 }
 0x2bb   : > { %1388 = vmatmul.bf16.gmra.mxu1 %v1950_v40  ;;  %v1428_v10 = vmul.f32 0.2, %v1350_v46 }
 0x2bc   : > { %v1491_v21 = vmax.f32 %v1261_v37, %v1427_v29 }
 0x2bd   : > { %v1320_v58 = vpop.f32.mrf.mxu2  ;;  %v1492_v2 = vmax.f32 %v1350_v46, %v1428_v10 }
 0x2be   : > { %v1321_v29 = vadd.f32 %v1320_v58, %v2580_v48  ;;  %v1316_v58 = vadd.f32 %v2624_v14, %v2567_v44 }
 0x2bf   : > { %v1262_v7 = vpop.f32.mrf.mxu0 }
 0x2c0   : > { %v1263_v34 = vadd.f32 %v1262_v7, %v1013_v32  ;;  %v1351_v9 = vpop.f32.mrf.mxu1 }
 0x2c1   : > { %v1352_v11 = vadd.f32 %v1351_v9, %v1013_v32 }
 0x2c2   : > { %v1429_v19 = vmul.f32 0.2, %v1263_v34 }
 0x2c3   : > { %v1430_v0 = vmul.f32 0.2, %v1352_v11 }
 0x2c4   : > { %v1493_v12 = vmax.f32 %v1263_v34, %v1429_v19 }
 0x2c5   : > { %v1322_v13 = vpop.f32.mrf.mxu2  ;;  %v1494_v15 = vmax.f32 %v1352_v11, %v1430_v0 }
 0x2c6   : > { %v2638_v16 = vpack.c.bf16 %v1493_v12, %v1491_v21  ;;  %v1323_v6 = vadd.f32 %v1322_v13, %v2558_v35  ;;  %v1318_v12 = vadd.f32 %v1317_v1, %v2569_v45  ;;  %v1311_v1 = vadd.f32 %v2613_v4, %v2578_v24 }
 0x2c7   : > { %v1265_v52 = vpop.f32.mrf.mxu0  ;;  %v2640_v18 = vpack.c.bf16 %v1494_v15, %v1492_v2  ;;  %v1475_v15 = vmul.f32 0.2, %v1321_v29 }
 0x2c8   : > { %v1354_v25 = vpop.f32.mrf.mxu1  ;;  %v1266_v26 = vadd.f32 %v1265_v52, %v2582_v49 }
 0x2c9   : > { %v1355_v32 = vadd.f32 %v1354_v25, %v2582_v49  ;;  %v1313_v25 = vadd.f32 %v2615_v30, %v2604_v57 }
 0x2ca   : > { %1304 = vmatmul.bf16.gmra.mxu0 %v1951_v31  ;;  %v1431_v54 = vmul.f32 0.2, %v1266_v26 }
 0x2cb   : > { %1393 = vmatmul.bf16.gmra.mxu1 %v1951_v31  ;;  %v1432_v63 = vmul.f32 0.2, %v1355_v32 }
 0x2cc   : > { %v1495_v37 = vmax.f32 %v1266_v26, %v1431_v54  ;;  %v1473_v26 = vmul.f32 0.2, %v1318_v12  ;;  %v1539_v54 = vmax.f32 %v1321_v29, %v1475_v15 }
 0x2cd   : > { %v1325_v47 = vpop.f32.mrf.mxu2  ;;  %v1496_v49 = vmax.f32 %v1355_v32, %v1432_v63  ;;  %v1469_v63 = vmul.f32 0.2, %v1313_v25 }
 0x2ce   : > { %v1326_v39 = vadd.f32 %v1325_v47, %v2546_v17 }
 0x2cf   : > { %v1267_v50 = vpop.f32.mrf.mxu0 }
 0x2d0   : > { %v1268_v60 = vadd.f32 %v1267_v50, %v2587_v51  ;;  %v1356_v3 = vpop.f32.mrf.mxu1  ;;  %v1479_v9 = vmul.f32 0.2, %v1326_v39  ;;  %v1471_v50 = vmul.f32 0.2, %v1316_v58 }
 0x2d1   : > { %v1357_v36 = vadd.f32 %v1356_v3, %v2587_v51  ;;  %v1477_v51 = vmul.f32 0.2, %v1323_v6  ;;  %v1537_v3 = vmax.f32 %v1318_v12, %v1473_v26 }
 0x2d2   : > { %v1433_v40 = vmul.f32 0.2, %v1268_v60  ;;  %v1543_v31 = vmax.f32 %v1326_v39, %v1479_v9  ;;  %v1467_v39 = vmul.f32 0.2, %v1311_v1 }
 0x2d3   : > { %v1434_v7 = vmul.f32 0.2, %v1357_v36  ;;  %v1541_v32 = vmax.f32 %v1323_v6, %v1477_v51 }
 0x2d4   : > { %v1497_v46 = vmax.f32 %v1268_v60, %v1433_v40 }
 0x2d5   : > { %v1327_v34 = vpop.f32.mrf.mxu2  ;;  %v1498_v10 = vmax.f32 %v1357_v36, %v1434_v7  ;;  %v1575_v40 = vpack.c.bf16 %v1541_v32, %v1539_v54  ;;  %v1535_v36 = vmax.f32 %v1316_v58, %v1471_v50  ;;  %v2670_v58 = vpop.f32.mrf.mxu3 }
 0x2d6   : > { %v1328_v19 = vadd.f32 %v1327_v34, %v2571_v20  ;;  %v2650_v11 = vpack.c.bf16 %v1497_v46, %v1495_v37  ;;  %v1533_v37 = vmax.f32 %v1313_v25, %v1469_v63  ;;  %v1531_v46 = vmax.f32 %v1311_v1, %v1467_v39 }
 0x2d7   : > { %v2652_v21 = vpop.f32.mrf.mxu0  ;;  %v2655_v13 = vpack.c.bf16 %v1498_v10, %v1496_v49  ;;  %v1573_v30 = vpack.c.bf16 %v1537_v3, %v1535_v36 }
 0x2d8   : > { %v1481_v0 = vmul.f32 0.2, %v1328_v19  ;;  %v2657_v2 = vpop.f32.mrf.mxu1  ;;  %v1571_v7 = vpack.c.bf16 %v1533_v37, %v1531_v46 }
 0x2da   : > { %v1545_v52 = vmax.f32 %v1328_v19, %v1481_v0 }
 0x2dc   : > { %v1577_v47 = vpack.c.bf16 %v1545_v52, %v1543_v31 }
 0x2de   : > { %1606 = vmatpush.bf16.msra.mxu3 %v1577_v47 }
 0x2df   : > { %v1272_v60 = vpop.f32.mrf.mxu0 }
 0x2e0   : > { %v2665_v14 = vpop.f32.mrf.mxu1  ;;  %v1273_v39 = vadd.f32 %v1272_v60, %v2576_v41 }
 0x2e2   : > { %1607 = vmatpush.bf16.msra.mxu3 %v1575_v40 }
 0x2e6   : > { %1608 = vmatpush.bf16.msra.mxu3 %v1573_v30 }
 0x2e7   : > { %v1275_v6 = vpop.f32.mrf.mxu0 }
 0x2e8   : > { %v2667_v49 = vpop.f32.mrf.mxu1  ;;  %v1276_v50 = vadd.f32 %v1275_v6, %v2563_v28  ;;  %v1437_v6 = vmul.f32 0.2, %v1273_v39 }
 0x2ea   : > { %1609 = vmatpush.bf16.msra.mxu3 %v1571_v7  ;;  %v2680_v7 = vpop.f32.mrf.mxu3  ;;  %v1501_v60 = vmax.f32 %v1273_v39, %v1437_v6  ;;  %v1360_v6 = vadd.f32 %v2657_v2, %v2595_v53 }
 0x2ef   : > { %v1277_v4 = vpop.f32.mrf.mxu0 }
 0x2f0   : > { %v1366_v29 = vpop.f32.mrf.mxu1  ;;  %v1278_v32 = vadd.f32 %v1277_v4, %v2589_v61  ;;  %v1271_v4 = vadd.f32 %v2652_v21, %v2595_v53 }
 0x2f2   : > { %v1441_v36 = vmul.f32 0.2, %v1278_v32 }
 0x2f7   : > { %v1280_v34 = vpop.f32.mrf.mxu0 }
 0x2f8   : > { %v1369_v9 = vpop.f32.mrf.mxu1  ;;  %v1281_v52 = vadd.f32 %v1280_v34, %v2554_v27  ;;  %v1439_v34 = vmul.f32 0.2, %v1276_v50 }
 0x2fa   : > { %v1443_v54 = vmul.f32 0.2, %v1281_v52 }
 0x2ff   : > { %v1282_v10 = vpop.f32.mrf.mxu0 }
 0x300   : > { %v1371_v19 = vpop.f32.mrf.mxu1  ;;  %v1283_v15 = vadd.f32 %v1282_v10, %v2556_v23  ;;  %v1507_v10 = vmax.f32 %v1281_v52, %v1443_v54 }
 0x302   : > { %v1445_v47 = vmul.f32 0.2, %v1283_v15 }
 0x304   : > { %v1509_v37 = vmax.f32 %v1283_v15, %v1445_v47 }
 0x307   : > { %v1285_v12 = vpop.f32.mrf.mxu0 }
 0x308   : > { %v1374_v51 = vpop.f32.mrf.mxu1  ;;  %v1286_v0 = vadd.f32 %v1285_v12, %v2565_v43  ;;  %v1505_v12 = vmax.f32 %v1278_v32, %v1441_v36 }
 0x30a   : > { %v1447_v25 = vmul.f32 0.2, %v1286_v0 }
 0x30c   : > { %v1511_v63 = vmax.f32 %v1286_v0, %v1447_v25  ;;  %v1559_v0 = vpack.c.bf16 %v1509_v37, %v1507_v10  ;;  %v1503_v25 = vmax.f32 %v1276_v50, %v1439_v34  ;;  %v1375_v50 = vadd.f32 %v1374_v51, %v2565_v43  ;;  %v2704_v37 = vld [vmem:[%s2820_s7] sm:$0xff] }
 0x30d   : > { %v1362_v34 = vadd.f32 %v2665_v14, %v2576_v41  ;;  %v1436_v14 = vmul.f32 0.2, %v1360_v6 }
 0x30e   : > { %v1557_v15 = vpack.c.bf16 %v1505_v12, %v1503_v25 }
 0x30f   : > { %v1287_v31 = vpop.f32.mrf.mxu0 }
 0x310   : > { %v1288_v26 = vadd.f32 %v1287_v31, %v2544_v38  ;;  %v1376_v40 = vpop.f32.mrf.mxu1  ;;  %v1435_v31 = vmul.f32 0.2, %v1271_v4 }
 0x311   : > { %v1377_v52 = vadd.f32 %v1376_v40, %v2544_v38  ;;  %v1370_v38 = vadd.f32 %v1369_v9, %v2554_v27  ;;  %v1448_v40 = vmul.f32 0.2, %v1375_v50 }
 0x312   : > { %v1449_v1 = vmul.f32 0.2, %v1288_v26 }
 0x313   : > { %v1450_v39 = vmul.f32 0.2, %v1377_v52  ;;  %v1512_v51 = vmax.f32 %v1375_v50, %v1448_v40 }
 0x314   : > { %v1513_v3 = vmax.f32 %v1288_v26, %v1449_v1  ;;  %v1499_v1 = vmax.f32 %v1271_v4, %v1435_v31 }
 0x315   : > { %v1514_v4 = vmax.f32 %v1377_v52, %v1450_v39 }
 0x316   : > { %v1561_v30 = vpack.c.bf16 %v1513_v3, %v1511_v63  ;;  %v2688_v63 = vpop.f32.mrf.mxu3  ;;  %v1555_v21 = vpack.c.bf16 %v1501_v60, %v1499_v1  ;;  %v1372_v3 = vadd.f32 %v1371_v19, %v2556_v23  ;;  %v1587_v23 = vunpack.c.l.b16 %v2704_v37 }
 0x317   : > { %v2678_v46 = vpop.f32.mrf.mxu0  ;;  %v1444_v19 = vmul.f32 0.2, %v1370_v38 }
 0x318   : > { %1593 = vmatpush.bf16.msra.mxu2 %v1561_v30  ;;  %v2684_v26 = vpop.f32.mrf.mxu1  ;;  %v1367_v30 = vadd.f32 %v1366_v29, %v2589_v61  ;;  %v1562_v61 = vpack.c.bf16 %v1514_v4, %v1512_v51  ;;  %v1589_v29 = vpack.c.b16 %v1587_v23, %v1587_v23 }
 0x319   : > { %v1508_v12 = vmax.f32 %v1370_v38, %v1444_v19  ;;  %v2728_v38 = vpop.permute.xlu0 %1082 }
 0x31a   : > { %v1442_v27 = vmul.f32 0.2, %v1367_v30 }
 0x31c   : > { %1594 = vmatpush.bf16.msra.mxu2 %v1559_v0  ;;  %v1506_v0 = vmax.f32 %v1367_v30, %v1442_v27 }
 0x31e   : > { %v2698_v36 = vpop.f32.mrf.mxu3 }
 0x31f   : > { %v2686_v47 = vpop.f32.mrf.mxu0 }
 0x320   : > { %1595 = vmatpush.bf16.msra.mxu2 %v1557_v15  ;;  %v2693_v32 = vpop.f32.mrf.mxu1 }
 0x324   : > { %1596 = vmatpush.bf16.msra.mxu2 %v1555_v21 }
 0x327   : > { %v2691_v54 = vpop.f32.mrf.mxu0 }
 0x328   : > { %1597 = vmatpush.bf16.msra.mxu2 %v2650_v11  ;;  %v1446_v11 = vmul.f32 0.2, %v1372_v3  ;;  %v2714_v10 = vpop.f32.mrf.mxu1 }
 0x32a   : > { %v1510_v9 = vmax.f32 %v1372_v3, %v1446_v11 }
 0x32c   : > { %1598 = vmatpush.bf16.msra.mxu2 %v2638_v16  ;;  %v1365_v16 = vadd.f32 %v2667_v49, %v2563_v28  ;;  %v2719_v28 = vpop.f32.mrf.mxu3  ;;  %v1438_v49 = vmul.f32 0.2, %v1362_v34  ;;  %v1560_v41 = vpack.c.bf16 %v1510_v9, %v1508_v12 }
 0x32e   : > { %v1502_v60 = vmax.f32 %v1362_v34, %v1438_v49  ;;  %v2744_v49 = vpop.permute.xlu0 %1067 }
 0x32f   : > { %v1297_v43 = vpop.f32.mrf.mxu0 }
 0x330   : > { %1599 = vmatpush.bf16.msra.mxu2 %v2629_v5  ;;  %v1440_v5 = vmul.f32 0.2, %v1365_v16  ;;  %v2721_v1 = vpop.f32.mrf.mxu1 }
 0x332   : > { %v1504_v25 = vmax.f32 %v1365_v16, %v1440_v5 }
 0x334   : > { %1600 = vmatpush.bf16.msra.mxu2 %v2620_v33  ;;  %v1558_v15 = vpack.c.bf16 %v1506_v0, %v1504_v25  ;;  %v1500_v33 = vmax.f32 %v1360_v6, %v1436_v14  ;;  %v1411_v21 = vpop.f32.mrf.mxu3  ;;  %v1291_v0 = vadd.f32 %v2678_v46, %v2744_v49 }
 0x336   : > { %v1556_v2 = vpack.c.bf16 %v1502_v60, %v1500_v33  ;;  %v1451_v33 = vmul.f32 0.2, %v1291_v0 }
 0x337   : > { %v1300_v31 = vpop.f32.mrf.mxu0  ;;  %1601 = vmatmul.bf16.vlgmr.msra.gmra.mxu2 %v1589_v29 }
 0x338   : > { %1619 = vmatpush.bf16.msrb.mxu2 %v1562_v61  ;;  %v2724_v52 = vpop.f32.mrf.mxu1  ;;  %v1301_v11 = vadd.f32 %v1300_v31, %v2600_v55  ;;  %v2740_v61 = vpop.permute.xlu1 %1072 }
 0x339   : > { %v1293_v6 = vadd.f32 %v2686_v47, %v2740_v61  ;;  %v1412_v47 = vadd.f32 %v1411_v21, %v2558_v35  ;;  %v1405_v35 = vadd.f32 %v2688_v63, %v2567_v44 }
 0x33a   : > { %v1459_v34 = vmul.f32 0.2, %v1301_v11 }
 0x33c   : > { %1620 = vmatpush.bf16.msrb.mxu2 %v1560_v41  ;;  %v1414_v3 = vpop.f32.mrf.mxu3  ;;  %v1523_v31 = vmax.f32 %v1301_v11, %v1459_v34  ;;  %v1453_v41 = vmul.f32 0.2, %v1293_v6 }
 0x33e   : > { %v1517_v46 = vmax.f32 %v1293_v6, %v1453_v41 }
 0x33f   : > { %v1302_v53 = vpop.f32.mrf.mxu0 }
 0x340   : > { %1621 = vmatpush.bf16.msrb.mxu2 %v1558_v15  ;;  %v1303_v40 = vadd.f32 %v1302_v53, %v2602_v56  ;;  %v2733_v4 = vpop.f32.mrf.mxu1 }
 0x342   : > { %v1461_v16 = vmul.f32 0.2, %v1303_v40 }
 0x344   : > { %1622 = vmatpush.bf16.msrb.mxu2 %v1556_v2  ;;  %v1416_v51 = vpop.f32.mrf.mxu3  ;;  %v1525_v12 = vmax.f32 %v1303_v40, %v1461_v16  ;;  %v1588_v40 = vunpack.c.h.b16 %v2704_v37  ;;  %v1472_v37 = vmul.f32 0.2, %v1405_v35 }
 0x346   : > { %v1567_v60 = vpack.c.bf16 %v1525_v12, %v1523_v31  ;;  %v1590_v16 = vpack.c.b16 %v1588_v40, %v1588_v40 }
 0x347   : > { %v1305_v50 = vpop.f32.mrf.mxu0 }
 0x348   : > { %1623 = vmatpush.bf16.msrb.mxu2 %v2655_v13  ;;  %v1306_v39 = vadd.f32 %v1305_v50, %v2611_v62  ;;  %v1394_v25 = vpop.f32.mrf.mxu1 }
 0x349   : > { %v1395_v34 = vadd.f32 %v1394_v25, %v2611_v62  ;;  %v1385_v62 = vadd.f32 %v2714_v10, %v2606_v59 }
 0x34a   : > { %v1463_v13 = vmul.f32 0.2, %v1306_v39 }
 0x34b   : > { %v1464_v12 = vmul.f32 0.2, %v1395_v34  ;;  %v1456_v41 = vmul.f32 0.2, %v1385_v62 }
 0x34c   : > { %1624 = vmatpush.bf16.msrb.mxu2 %v2640_v18  ;;  %v1298_v18 = vadd.f32 %v1297_v43, %v2728_v38  ;;  %v1527_v27 = vmax.f32 %v1306_v39, %v1463_v13  ;;  %v1417_v43 = vadd.f32 %v1416_v51, %v2571_v20  ;;  %v1410_v20 = vadd.f32 %v2719_v28, %v2580_v48 }
 0x34d   : > { %v1407_v39 = vadd.f32 %v2698_v36, %v2569_v45  ;;  %v1402_v48 = vadd.f32 %v2680_v7, %v2604_v57  ;;  %v1400_v36 = vadd.f32 %v2670_v58, %v2578_v24  ;;  %v1536_v7 = vmax.f32 %v1405_v35, %v1472_v37 }
 0x34e   : > { %v1457_v5 = vmul.f32 0.2, %v1298_v18  ;;  %v1482_v15 = vmul.f32 0.2, %v1417_v43  ;;  %v1476_v21 = vmul.f32 0.2, %v1410_v20  ;;  %v1528_v31 = vmax.f32 %v1395_v34, %v1464_v12 }
 0x34f   : > { %v1307_v30 = vpop.f32.mrf.mxu0  ;;  %v1474_v13 = vmul.f32 0.2, %v1407_v39  ;;  %v1470_v51 = vmul.f32 0.2, %v1402_v48  ;;  %v1468_v57 = vmul.f32 0.2, %v1400_v36 }
 0x350   : > { %1625 = vmatpush.bf16.msrb.mxu2 %v2631_v42  ;;  %v1308_v23 = vadd.f32 %v1307_v30, %v2591_v22  ;;  %v1296_v42 = vadd.f32 %v2691_v54, %v2606_v59  ;;  %v1521_v14 = vmax.f32 %v1298_v18, %v1457_v5  ;;  %v1515_v30 = vmax.f32 %v1291_v0, %v1451_v33  ;;  %v1396_v45 = vpop.f32.mrf.mxu1 }
 0x351   : > { %v1538_v44 = vmax.f32 %v1407_v39, %v1474_v13  ;;  %v1397_v63 = vadd.f32 %v1396_v45, %v2591_v22  ;;  %v1532_v58 = vmax.f32 %v1400_v36, %v1468_v57  ;;  %v1390_v5 = vadd.f32 %v2724_v52, %v2600_v55 }
 0x352   : > { %v1465_v19 = vmul.f32 0.2, %v1308_v23  ;;  %v1455_v54 = vmul.f32 0.2, %v1296_v42  ;;  %v1563_v28 = vpack.c.bf16 %v1517_v46, %v1515_v30  ;;  %v1387_v22 = vadd.f32 %v2721_v1, %v2728_v38 }
 0x353   : > { %v1466_v6 = vmul.f32 0.2, %v1397_v63  ;;  %v1574_v24 = vpack.c.bf16 %v1538_v44, %v1536_v7  ;;  %v1380_v52 = vadd.f32 %v2684_v26, %v2744_v49  ;;  %v1520_v59 = vmax.f32 %v1385_v62, %v1456_v41  ;;  %v1584_v49 = vpop.permute.xlu2 %1583 }
 0x354   : > { %1626 = vmatpush.bf16.msrb.mxu2 %v2622_v8  ;;  %v1529_v9 = vmax.f32 %v1308_v23, %v1465_v19  ;;  %v1519_v53 = vmax.f32 %v1296_v42, %v1455_v54  ;;  %v1540_v19 = vmax.f32 %v1410_v20, %v1476_v21  ;;  %v1460_v54 = vmul.f32 0.2, %v1390_v5 }
 0x356   : > { %v1569_v8 = vpack.c.bf16 %v1529_v9, %v1527_v27  ;;  %v1565_v50 = vpack.c.bf16 %v1521_v14, %v1519_v53  ;;  %v1534_v27 = vmax.f32 %v1402_v48, %v1470_v51  ;;  %v1392_v9 = vadd.f32 %v2733_v4, %v2602_v56 }
 0x357   : > { %1627 = vmatmul.bf16.vlgmr.msrb.gmra.mxu2 %v1589_v29  ;;  %v1415_v29 = vadd.f32 %v1414_v3, %v2546_v17  ;;  %v1478_v17 = vmul.f32 0.2, %v1412_v47  ;;  %v1546_v3 = vmax.f32 %v1417_v43, %v1482_v15  ;;  %v1530_v43 = vmax.f32 %v1397_v63, %v1466_v6 }
 0x358   : > { %1610 = vmatpush.bf16.msra.mxu3 %v1569_v8  ;;  %v1462_v8 = vmul.f32 0.2, %v1392_v9  ;;  %v1572_v0 = vpack.c.bf16 %v1534_v27, %v1532_v58  ;;  %v1382_v56 = vadd.f32 %v2693_v32, %v2740_v61  ;;  %v1458_v4 = vmul.f32 0.2, %v1387_v22 }
 0x359   : > { %v1480_v2 = vmul.f32 0.2, %v1415_v29  ;;  %v1542_v23 = vmax.f32 %v1412_v47, %v1478_v17  ;;  %v1570_v55 = vpack.c.bf16 %v1530_v43, %v1528_v31  ;;  %v1524_v1 = vmax.f32 %v1390_v5, %v1460_v54 }
 0x35a   : > { %v1454_v38 = vmul.f32 0.2, %v1382_v56  ;;  %v1522_v14 = vmax.f32 %v1387_v22, %v1458_v4 }
 0x35b   : > { %v1544_v11 = vmax.f32 %v1415_v29, %v1480_v2  ;;  %v1576_v42 = vpack.c.bf16 %v1542_v23, %v1540_v19  ;;  %v1526_v29 = vmax.f32 %v1392_v9, %v1462_v8 }
 0x35c   : > { %1611 = vmatpush.bf16.msra.mxu3 %v1567_v60  ;;  %v1452_v60 = vmul.f32 0.2, %v1380_v52  ;;  %v1518_v10 = vmax.f32 %v1382_v56, %v1454_v38  ;;  %v1566_v47 = vpack.c.bf16 %v1522_v14, %v1520_v59 }
 0x35d   : > { %v1578_v18 = vpack.c.bf16 %v1546_v3, %v1544_v11  ;;  %v1568_v25 = vpack.c.bf16 %v1526_v29, %v1524_v1 }
 0x35e   : > { %v1516_v15 = vmax.f32 %v1380_v52, %v1452_v60 }
 0x360   : > { %1612 = vmatpush.bf16.msra.mxu3 %v1565_v50  ;;  %v1564_v32 = vpack.c.bf16 %v1518_v10, %v1516_v15 }
 0x364   : > { %1613 = vmatpush.bf16.msra.mxu3 %v1563_v28 }
 0x367   : > { %1614 = vmatmul.bf16.vlgmr.msra.gmra.mxu3 %v1590_v16 }
 0x368   : > { %1632 = vmatpush.bf16.msrb.mxu3 %v1578_v18 }
 0x36c   : > { %1633 = vmatpush.bf16.msrb.mxu3 %v1576_v42 }
 0x370   : > { %1634 = vmatpush.bf16.msrb.mxu3 %v1574_v24 }
 0x374   : > { %1635 = vmatpush.bf16.msrb.mxu3 %v1572_v0 }
 0x378   : > { %1636 = vmatpush.bf16.msrb.mxu3 %v1570_v55 }
 0x37c   : > { %1637 = vmatpush.bf16.msrb.mxu3 %v1568_v25 }
 0x380   : > { %1638 = vmatpush.bf16.msrb.mxu3 %v1566_v47 }
 0x384   : > { %1639 = vmatpush.bf16.msrb.mxu3 %v1564_v32 }
 0x387   : > { %1640 = vmatmul.bf16.vlgmr.msrb.gmra.mxu3 %v1590_v16 }
 0x3ba   : > { %v1602_v61 = vpop.f32.mrf.mxu2 }
 0x3bb   : > { %v1603_v20 = vadd.f32 %v1602_v61, %v1584_v49 }
 0x3c2   : > { %v1604_v33 = vpop.f32.mrf.mxu2 }
 0x3da   : > { %v1628_v53 = vpop.f32.mrf.mxu2 }
 0x3db   : > { %v1629_v13 = vadd.f32 %v1628_v53, %v1584_v49 }
 0x3e2   : > { %v1630_v26 = vpop.f32.mrf.mxu2 }
 0x3ea   : > { %v1615_v2 = vpop.f32.mrf.mxu3 }
 0x3eb   : > { %v1616_v46 = vadd.f32 %v1615_v2, %v1603_v20 }
 0x3ed   : > { %v1645_v50 = vmax.f32 %v1616_v46, 0.0 }
 0x3ef   : > { %v1647_v39 = vrot.slane %v1645_v50, 4 }
 0x3f1   : > { %v1648_v17 = vmax.f32 %v1645_v50, %v1647_v39 }
 0x3f2   : > { %v1617_v3 = vpop.f32.mrf.mxu3 }
 0x3f3   : > { %v1649_v40 = vrot.slane %v1648_v17, 2 }
 0x3f5   : > { %v1650_v30 = vmax.f32 %v1648_v17, %v1649_v40 }
 0x3f7   : > { %v1651_v35 = vrot.slane %v1650_v30, 1 }
 0x3f9   : > { %v1652_v21 = vmax.f32 %v1650_v30, %v1651_v35 }
 0x3fb   : > { %v1659_v11 = vsub.f32 %v1645_v50, %v1652_v21 }
 0x3fd   : > { %v1661_v48 = vmul.f32 1.442695, %v1659_v11 }
 0x3ff   : > { %2032 = vpow2.f32 %v1661_v48 }
 0x405   : > { %v2033_v28 = vpop.eup %2032 }
 0x406   : > { %v1665_v23 = vrot.slane %v2033_v28, 4 }
 0x408   : > { %v1666_v45 = vadd.f32 %v2033_v28, %v1665_v23 }
 0x40a   : > { %v1641_v18 = vpop.f32.mrf.mxu3  ;;  %v1667_v37 = vrot.slane %v1666_v45, 2 }
 0x40b   : > { %v1642_v16 = vadd.f32 %v1641_v18, %v1629_v13 }
 0x40c   : > { %v1668_v51 = vadd.f32 %v1667_v37, %v1666_v45 }
 0x40d   : > { %v1646_v36 = vmax.f32 %v1642_v16, 0.0 }
 0x40e   : > { %v1669_v63 = vrot.slane %v1668_v51, 1 }
 0x40f   : > { %v1653_v19 = vrot.slane %v1646_v36, 4 }
 0x410   : > { %v1670_v7 = vadd.f32 %v1669_v63, %v1668_v51 }
 0x411   : > { %v1654_v44 = vmax.f32 %v1646_v36, %v1653_v19 }
 0x412   : > { %v1643_v42 = vpop.f32.mrf.mxu3  ;;  %2034 = vrcp.f32 %v1670_v7 }
 0x413   : > { %v1655_v57 = vrot.slane %v1654_v44, 2 }
 0x415   : > { %v1656_v34 = vmax.f32 %v1654_v44, %v1655_v57 }
 0x417   : > { %v1657_v27 = vrot.slane %v1656_v34, 1 }
 0x418   : > { %v2035_v6 = vpop.eup %2034 }
 0x419   : > { %v1658_v9 = vmax.f32 %v1656_v34, %v1657_v27  ;;  %v1679_v58 = vmul.f32 %v2035_v6, %v2033_v28 }
 0x41b   : > { %v1660_v24 = vsub.f32 %v1646_v36, %v1658_v9  ;;  %1681 = vst [vmem:[%s350_s26] sm:$0xff] %v1679_v58 }
 0x41d   : > { %v1663_v5 = vmul.f32 1.442695, %v1660_v24 }
 0x41f   : > { %2036 = vpow2.f32 %v1663_v5 }
 0x425   : > { %v2037_v12 = vpop.eup %2036 }
 0x426   : > { %v1671_v22 = vrot.slane %v2037_v12, 4 }
 0x428   : > { %v1672_v8 = vadd.f32 %v2037_v12, %v1671_v22 }
 0x42a   : > { %v1673_v43 = vrot.slane %v1672_v8, 2 }
 0x42c   : > { %v1674_v0 = vadd.f32 %v1673_v43, %v1672_v8 }
 0x42e   : > { %v1675_v62 = vrot.slane %v1674_v0, 1 }
 0x430   : > { %v1676_v54 = vadd.f32 %v1675_v62, %v1674_v0 }
 0x432   : > { %2038 = vrcp.f32 %v1676_v54 }
 0x438   : > { %v2039_v31 = vpop.eup %2038 }
 0x439   : > { %v1680_v56 = vmul.f32 %v2039_v31, %v2037_v12 }
 0x43b   : > { %1682 = vst [vmem:[%s350_s26 + $0x8] sm:$0xff] %v1680_v56 }
 0x43c   : > { %2067 = shalt.err (!%p2064_p5)
}
 0x43d   : > { %1973 = dma.vmem_to_hbm [thread:$0]  (%p2211_p4), %s1700_s16, 256, %s1702_s18, %s1684_s20  }
 0x43e PF: > { %p1979_p6 = scmp.ge.s32.totalorder %s2118_s14, 2  ;;  %s1713_s24 = sand.u32 1, %s2098_s30  }
 0x43f   : > { %s1714_s0 = scalar_lea.sflag [#allocation3], %s1713_s24 }
 0x440   : > { %p1976_p7 = pnand %p1979_p6, %p2218_p8 }
 0x442   : > { %p1977_p9 = pneg %p1976_p7 }
 0x444   : > { %2093 = dma.done.wait (%p1977_p9), %s1714_s0, 256  }
 0x445   : > { %2095 = vsyncadd (%p1977_p9), %s1714_s0, 4294967040  ;;  %s22_s14 = sadd.s32 1, %s2118_s14   ;;  %s2827_s30 = smov %s2102_s10 }
 0x446   : > { %p19_p10 = scmp.ge.s32.totalorder %s22_s14, 4   ;;  %s2828_s10 = smov %s2106_s11 }
 0x447   : > { %s2829_s11 = smov %s2224_s22  ;;  %s2830_s12 = smov %s2114_s13 }
 0x448   : > { %s2831_s13 = smov %s2833_s17  ;;  %21 = sbr.rel (!%p19_p10) target bundleno = 6 (0x6), region = 91 }
 0x44d   :  { %1720 = vsyncpa [#allocation3], 1 }
 0x44e   :  { %1722 = vsyncpa [#allocation3 + $0x1], 1 }

</bundles_post_ra>
